<compile_context>
chip_gen: v5e
topology: v5e:2x2
jax: 0.10.0
libtpu: 0.0.40
codegen_flags: <defaults>
</compile_context>

<pallas_src>
import math
import functools

import jax
import jax.numpy as jnp
from jax.experimental import pallas as pl
from jax.experimental.pallas import tpu as pltpu


# ----------------------------------------------------------------------------
# In-kernel helpers (operate on VMEM-resident values)
# ----------------------------------------------------------------------------

def _layernorm(z, g, b, eps=1e-5):
    # PyTorch LayerNorm: biased variance, eps=1e-5, affine.  f32 throughout.
    mean = jnp.mean(z, axis=-1, keepdims=True)
    zc = z - mean
    var = jnp.mean(zc * zc, axis=-1, keepdims=True)
    return zc * jax.lax.rsqrt(var + eps) * g + b


def _mha(q2d, k2d, v2d, wo, bo, *, nhead, batch, sq, sk):
    """Multi-head attention for the whole batch at once.

    q2d: (B*Sq, E) f32 (already 1/sqrt(Dh)-scaled via folded Q weights)
    k2d/v2d: (B*Sk, E) f32; wo: (E, E) bf16; bo: (1, E) f32.

    Heads loop statically (Dh is tiny); each head processes every batch
    element in one B-batched einsum.  Per-head outputs fold directly into
    the output projection:
        concat_h(o_h) @ Wo == sum_h o_h @ Wo[h*Dh:(h+1)*Dh, :]
    avoiding any in-kernel concatenate / transpose.
    """
    E = q2d.shape[-1]
    Dh = E // nhead
    bf16 = jnp.bfloat16

    # Leading-dim splits are f32-sublane-tile aligned (S multiple of 8).
    q3 = q2d.reshape(batch, sq, E).astype(bf16)
    k3 = k2d.reshape(batch, sk, E).astype(bf16)
    v3 = v2d.reshape(batch, sk, E).astype(bf16)

    acc = jnp.zeros((batch * sq, wo.shape[1]), jnp.float32)
    for h in range(nhead):                       # static unroll over heads
        lo, hi = h * Dh, (h + 1) * Dh
        # scores (f32 accumulation on the MXU, bf16 operands)
        s = jnp.einsum('bqd,bkd->bqk', q3[:, :, lo:hi], k3[:, :, lo:hi],
                       preferred_element_type=jnp.float32)
        s = s - jnp.max(s, axis=-1, keepdims=True)
        p = jnp.exp(s)
        inv = 1.0 / jnp.sum(p, axis=-1, keepdims=True)   # one divide per row
        p = (p * inv).astype(bf16)
        oh = jnp.einsum('bqk,bkd->bqd', p, v3[:, :, lo:hi],
                        preferred_element_type=jnp.float32)
        oh2 = oh.reshape(batch * sq, Dh).astype(bf16)
        acc = acc + jnp.dot(oh2, wo[lo:hi, :],
                            preferred_element_type=jnp.float32)
    return acc + bo


# ----------------------------------------------------------------------------
# Fused decoder-layer kernel: single invocation, B folded into the M dim
# ----------------------------------------------------------------------------

def _decoder_layer_kernel(
        tgt_ref, mem_ref,
        wqkv_sa_ref, bqkv_sa_ref, wo_sa_ref, bo_sa_ref,
        wq_ca_ref, bq_ca_ref, wkv_ca_ref, bkv_ca_ref, wo_ca_ref, bo_ca_ref,
        w1_ref, b1_ref, w2_ref, b2_ref,
        ln1_g_ref, ln1_b_ref, ln2_g_ref, ln2_b_ref, ln3_g_ref, ln3_b_ref,
        out_ref, *, nhead, batch, s_tgt, s_mem):
    bf16 = jnp.bfloat16
    x = tgt_ref[...]                              # (B*St, E) f32 residual
    mem = mem_ref[...]                            # (B*Sm, E) f32
    E = x.shape[-1]

    # ---- self attention (fused QKV projection, scale folded into Q) --------
    qkv = jnp.dot(x.astype(bf16), wqkv_sa_ref[...],
                  preferred_element_type=jnp.float32) + bqkv_sa_ref[...]
    sa = _mha(qkv[:, :E], qkv[:, E:2 * E], qkv[:, 2 * E:],
              wo_sa_ref[...], bo_sa_ref[...],
              nhead=nhead, batch=batch, sq=s_tgt, sk=s_tgt)
    x = _layernorm(x + sa, ln1_g_ref[...], ln1_b_ref[...])

    # ---- cross attention (fused KV projection on memory) -------------------
    q = jnp.dot(x.astype(bf16), wq_ca_ref[...],
                preferred_element_type=jnp.float32) + bq_ca_ref[...]
    kv = jnp.dot(mem.astype(bf16), wkv_ca_ref[...],
                 preferred_element_type=jnp.float32) + bkv_ca_ref[...]
    ca = _mha(q, kv[:, :E], kv[:, E:],
              wo_ca_ref[...], bo_ca_ref[...],
              nhead=nhead, batch=batch, sq=s_tgt, sk=s_mem)
    x = _layernorm(x + ca, ln2_g_ref[...], ln2_b_ref[...])

    # ---- feed-forward (ReLU), add + LN epilogue -----------------------------
    h = jnp.maximum(jnp.dot(x.astype(bf16), w1_ref[...],
                            preferred_element_type=jnp.float32) + b1_ref[...],
                    0.0)
    y = jnp.dot(h.astype(bf16), w2_ref[...],
                preferred_element_type=jnp.float32) + b2_ref[...]
    x = _layernorm(x + y, ln3_g_ref[...], ln3_b_ref[...])

    out_ref[...] = x.astype(out_ref.dtype)


# ----------------------------------------------------------------------------
# Host-side wrapper
# ----------------------------------------------------------------------------

def decoder_layer_fwd(tgt, memory, params, nhead):
    """tgt: (B, S_tgt, E), memory: (B, S_mem, E) -> (B, S_tgt, E)."""
    B, St, E = tgt.shape
    Sm = memory.shape[1]
    Dh = E // nhead
    scale = 1.0 / math.sqrt(Dh)
    p = params
    bf16 = jnp.bfloat16

    def row(v):  # 1-D param -> (1, D) lane-vector (kept in f32)
        return v.reshape(1, -1)

    # Fold the 1/sqrt(Dh) attention scale into the Q projection (weights AND
    # bias) once on the host, then store all matmul weights as bf16.
    sa_wqkv = p["sa_wqkv"].at[:, :E].multiply(scale)
    sa_bqkv = p["sa_bqkv"].at[:E].multiply(scale)
    ca_wq = p["ca_wq"] * scale
    ca_bq = p["ca_bq"] * scale

    weights = [
        sa_wqkv.astype(bf16), row(sa_bqkv),
        p["sa_wo"].astype(bf16), row(p["sa_bo"]),
        ca_wq.astype(bf16), row(ca_bq),
        p["ca_wkv"].astype(bf16), row(p["ca_bkv"]),
        p["ca_wo"].astype(bf16), row(p["ca_bo"]),
        p["w1"].astype(bf16), row(p["b1"]),
        p["w2"].astype(bf16), row(p["b2"]),
        row(p["ln1_g"]), row(p["ln1_b"]),
        row(p["ln2_g"]), row(p["ln2_b"]),
        row(p["ln3_g"]), row(p["ln3_b"]),
    ]

    kernel = functools.partial(_decoder_layer_kernel, nhead=nhead,
                               batch=B, s_tgt=St, s_mem=Sm)

    # Single invocation (no grid): every input lives whole-array in VMEM and
    # every intermediate stays in VMEM/vregs — no HBM round trips, no
    # per-grid-step overhead.  Activations are passed as 2-D (B*S, E) slabs
    # so B rides the M/sublane dimension of every matmul.
    out2d = pl.pallas_call(
        kernel,
        out_shape=jax.ShapeDtypeStruct((B * St, E), tgt.dtype),
        compiler_params=pltpu.CompilerParams(
            vmem_limit_bytes=32 * 1024 * 1024),
    )(tgt.reshape(B * St, E), memory.reshape(B * Sm, E), *weights)
    return out2d.reshape(B, St, E)


# ----------------------------------------------------------------------------
# Deterministic parameter init (equivalent split layout of PyTorch's MHA
# in_proj / out_proj; Linear weights stored transposed as (Din, Dout)).
# NOTE: real PyTorch checkpoints store (Dout, Din) — transpose when loading.
# ----------------------------------------------------------------------------

def init_params(key, d_model, dim_ff):
    E, F = d_model, dim_ff
    ks = jax.random.split(key, 7)

    def w(k, shape):
        return 0.02 * jax.random.normal(k, shape, jnp.float32)

    return {
        # self-attention: fused QKV projection + output projection
        "sa_wqkv": w(ks[0], (E, 3 * E)),
        "sa_bqkv": jnp.zeros((3 * E,), jnp.float32),
        "sa_wo": w(ks[1], (E, E)),
        "sa_bo": jnp.zeros((E,), jnp.float32),
        # cross-attention: Q from tgt, fused KV from memory, output projection
        "ca_wq": w(ks[2], (E, E)),
        "ca_bq": jnp.zeros((E,), jnp.float32),
        "ca_wkv": w(ks[3], (E, 2 * E)),
        "ca_bkv": jnp.zeros((2 * E,), jnp.float32),
        "ca_wo": w(ks[4], (E, E)),
        "ca_bo": jnp.zeros((E,), jnp.float32),
        # feed-forward
        "w1": w(ks[5], (E, F)), "b1": jnp.zeros((F,), jnp.float32),
        "w2": w(ks[6], (F, E)), "b2": jnp.zeros((E,), jnp.float32),
        # layer norms
        "ln1_g": jnp.ones((E,), jnp.float32), "ln1_b": jnp.zeros((E,), jnp.float32),
        "ln2_g": jnp.ones((E,), jnp.float32), "ln2_b": jnp.zeros((E,), jnp.float32),
        "ln3_g": jnp.ones((E,), jnp.float32), "ln3_b": jnp.zeros((E,), jnp.float32),
    }


# ----------------------------------------------------------------------------
# Main
# ----------------------------------------------------------------------------

if __name__ == "__main__":
    B, S_tgt, S_mem = 2, 8, 8
    d_model, nhead, dim_ff = 32, 4, 64

    root = jax.random.PRNGKey(0)
    k_tgt, k_mem, k_par = jax.random.split(root, 3)

    tgt = jax.random.normal(k_tgt, (B, S_tgt, d_model), jnp.float32)
    memory = jax.random.normal(k_mem, (B, S_mem, d_model), jnp.float32)
    params = init_params(k_par, d_model, dim_ff)

    out = decoder_layer_fwd(tgt, memory, params, nhead)
    out = jax.block_until_ready(out)

    assert out.shape == (B, S_tgt, d_model)
    assert bool(jnp.all(jnp.isfinite(out)))
    print("KERNEL_OK")
</pallas_src>

<mosaic_0001>
module attributes {stable_mosaic.version = 11 : i64} {
  func.func @_decoder_layer_kernel(%arg0: memref<16x32xf32, #tpu.memory_space<vmem>>, %arg1: memref<16x32xf32, #tpu.memory_space<vmem>>, %arg2: memref<32x96xbf16, #tpu.memory_space<vmem>>, %arg3: memref<1x96xf32, #tpu.memory_space<vmem>>, %arg4: memref<32x32xbf16, #tpu.memory_space<vmem>>, %arg5: memref<1x32xf32, #tpu.memory_space<vmem>>, %arg6: memref<32x32xbf16, #tpu.memory_space<vmem>>, %arg7: memref<1x32xf32, #tpu.memory_space<vmem>>, %arg8: memref<32x64xbf16, #tpu.memory_space<vmem>>, %arg9: memref<1x64xf32, #tpu.memory_space<vmem>>, %arg10: memref<32x32xbf16, #tpu.memory_space<vmem>>, %arg11: memref<1x32xf32, #tpu.memory_space<vmem>>, %arg12: memref<32x64xbf16, #tpu.memory_space<vmem>>, %arg13: memref<1x64xf32, #tpu.memory_space<vmem>>, %arg14: memref<64x32xbf16, #tpu.memory_space<vmem>>, %arg15: memref<1x32xf32, #tpu.memory_space<vmem>>, %arg16: memref<1x32xf32, #tpu.memory_space<vmem>>, %arg17: memref<1x32xf32, #tpu.memory_space<vmem>>, %arg18: memref<1x32xf32, #tpu.memory_space<vmem>>, %arg19: memref<1x32xf32, #tpu.memory_space<vmem>>, %arg20: memref<1x32xf32, #tpu.memory_space<vmem>>, %arg21: memref<1x32xf32, #tpu.memory_space<vmem>>, %arg22: memref<16x32xf32, #tpu.memory_space<vmem>>) attributes {dimension_semantics = [], scalar_prefetch = 0 : i64, scratch_operands = 0 : i64, tpu.core_type = #tpu.core_type<tc>} {
    %c0 = arith.constant 0 : index
    %c0_0 = arith.constant 0 : index
    %0 = vector.load %arg0[%c0, %c0_0] : memref<16x32xf32, #tpu.memory_space<vmem>>, vector<16x32xf32>
    %c0_1 = arith.constant 0 : index
    %c0_2 = arith.constant 0 : index
    %1 = vector.load %arg1[%c0_1, %c0_2] : memref<16x32xf32, #tpu.memory_space<vmem>>, vector<16x32xf32>
    %2 = arith.truncf %0 : vector<16x32xf32> to vector<16x32xbf16>
    %c0_3 = arith.constant 0 : index
    %c0_4 = arith.constant 0 : index
    %3 = vector.load %arg2[%c0_3, %c0_4] : memref<32x96xbf16, #tpu.memory_space<vmem>>, vector<32x96xbf16>
    %cst = arith.constant dense<0.000000e+00> : vector<16x96xf32>
    %4 = tpu.matmul %2, %3, %cst {dimension_numbers = #tpu.dot_dimension_numbers<[1], [0], [0], [1], [0, 0, 1, 1], [], []>} : vector<16x32xbf16>, vector<32x96xbf16>, vector<16x96xf32> -> vector<16x96xf32>
    %c0_5 = arith.constant 0 : index
    %c0_6 = arith.constant 0 : index
    %5 = vector.load %arg3[%c0_5, %c0_6] : memref<1x96xf32, #tpu.memory_space<vmem>>, vector<1x96xf32>
    %6 = vector.broadcast %5 : vector<1x96xf32> to vector<16x96xf32>
    %7 = arith.addf %4, %6 : vector<16x96xf32>
    %8 = vector.extract_strided_slice %7 {offsets = [0, 0], sizes = [16, 32], strides = [1, 1]} : vector<16x96xf32> to vector<16x32xf32>
    %9 = vector.extract_strided_slice %7 {offsets = [0, 32], sizes = [16, 32], strides = [1, 1]} : vector<16x96xf32> to vector<16x32xf32>
    %10 = vector.extract_strided_slice %7 {offsets = [0, 64], sizes = [16, 32], strides = [1, 1]} : vector<16x96xf32> to vector<16x32xf32>
    %c0_7 = arith.constant 0 : index
    %c0_8 = arith.constant 0 : index
    %11 = vector.load %arg4[%c0_7, %c0_8] : memref<32x32xbf16, #tpu.memory_space<vmem>>, vector<32x32xbf16>
    %c0_9 = arith.constant 0 : index
    %c0_10 = arith.constant 0 : index
    %12 = vector.load %arg5[%c0_9, %c0_10] : memref<1x32xf32, #tpu.memory_space<vmem>>, vector<1x32xf32>
    %13 = vector.shape_cast %8 : vector<16x32xf32> to vector<2x8x32xf32>
    %14 = arith.truncf %13 : vector<2x8x32xf32> to vector<2x8x32xbf16>
    %15 = vector.shape_cast %9 : vector<16x32xf32> to vector<2x8x32xf32>
    %16 = arith.truncf %15 : vector<2x8x32xf32> to vector<2x8x32xbf16>
    %17 = vector.shape_cast %10 : vector<16x32xf32> to vector<2x8x32xf32>
    %18 = arith.truncf %17 : vector<2x8x32xf32> to vector<2x8x32xbf16>
    %cst_11 = arith.constant 0.000000e+00 : f32
    %19 = vector.broadcast %cst_11 : f32 to vector<16x32xf32>
    %20 = vector.extract_strided_slice %14 {offsets = [0, 0, 0], sizes = [2, 8, 8], strides = [1, 1, 1]} : vector<2x8x32xbf16> to vector<2x8x8xbf16>
    %21 = vector.extract_strided_slice %16 {offsets = [0, 0, 0], sizes = [2, 8, 8], strides = [1, 1, 1]} : vector<2x8x32xbf16> to vector<2x8x8xbf16>
    "tpu.trace_start"() <{level = 10 : i32, message = "bqd,bkd->bqk"}> : () -> ()
    %cst_12 = arith.constant dense<0.000000e+00> : vector<2x8x8xf32>
    %22 = tpu.matmul %20, %21, %cst_12 {dimension_numbers = #tpu.dot_dimension_numbers<[2], [2], [1], [1], [0, 0, 0, 1, 1, 1], [0], [0]>} : vector<2x8x8xbf16>, vector<2x8x8xbf16>, vector<2x8x8xf32> -> vector<2x8x8xf32>
    "tpu.trace_stop"() : () -> ()
    %cst_13 = arith.constant dense<0xFF800000> : vector<2x8xf32>
    %23 = vector.multi_reduction <maximumf>, %22, %cst_13 [2] : vector<2x8x8xf32> to vector<2x8xf32>
    %24 = vector.shape_cast %23 : vector<2x8xf32> to vector<2x8x1xf32>
    %25 = vector.broadcast %24 : vector<2x8x1xf32> to vector<2x8x8xf32>
    %26 = arith.subf %22, %25 : vector<2x8x8xf32>
    %27 = math.exp %26 : vector<2x8x8xf32>
    %cst_14 = arith.constant dense<0.000000e+00> : vector<2x8xf32>
    %28 = vector.multi_reduction <add>, %27, %cst_14 [2] : vector<2x8x8xf32> to vector<2x8xf32>
    %29 = vector.shape_cast %28 : vector<2x8xf32> to vector<2x8x1xf32>
    %cst_15 = arith.constant 1.000000e+00 : f32
    %30 = vector.broadcast %cst_15 : f32 to vector<2x8x1xf32>
    %31 = arith.divf %30, %29 : vector<2x8x1xf32>
    %32 = vector.broadcast %31 : vector<2x8x1xf32> to vector<2x8x8xf32>
    %33 = arith.mulf %27, %32 : vector<2x8x8xf32>
    %34 = arith.truncf %33 : vector<2x8x8xf32> to vector<2x8x8xbf16>
    %35 = vector.extract_strided_slice %18 {offsets = [0, 0, 0], sizes = [2, 8, 8], strides = [1, 1, 1]} : vector<2x8x32xbf16> to vector<2x8x8xbf16>
    "tpu.trace_start"() <{level = 10 : i32, message = "bqk,bkd->bqd"}> : () -> ()
    %cst_16 = arith.constant dense<0.000000e+00> : vector<2x8x8xf32>
    %36 = tpu.matmul %34, %35, %cst_16 {dimension_numbers = #tpu.dot_dimension_numbers<[2], [1], [1], [2], [0, 0, 0, 1, 1, 2], [0], [0]>} : vector<2x8x8xbf16>, vector<2x8x8xbf16>, vector<2x8x8xf32> -> vector<2x8x8xf32>
    "tpu.trace_stop"() : () -> ()
    %37 = vector.shape_cast %36 : vector<2x8x8xf32> to vector<16x8xf32>
    %38 = arith.truncf %37 : vector<16x8xf32> to vector<16x8xbf16>
    %39 = vector.extract_strided_slice %11 {offsets = [0, 0], sizes = [8, 32], strides = [1, 1]} : vector<32x32xbf16> to vector<8x32xbf16>
    %cst_17 = arith.constant dense<0.000000e+00> : vector<16x32xf32>
    %40 = tpu.matmul %38, %39, %cst_17 {dimension_numbers = #tpu.dot_dimension_numbers<[1], [0], [0], [1], [0, 0, 1, 1], [], []>} : vector<16x8xbf16>, vector<8x32xbf16>, vector<16x32xf32> -> vector<16x32xf32>
    %41 = arith.addf %19, %40 : vector<16x32xf32>
    %42 = vector.extract_strided_slice %14 {offsets = [0, 0, 8], sizes = [2, 8, 8], strides = [1, 1, 1]} : vector<2x8x32xbf16> to vector<2x8x8xbf16>
    %43 = vector.extract_strided_slice %16 {offsets = [0, 0, 8], sizes = [2, 8, 8], strides = [1, 1, 1]} : vector<2x8x32xbf16> to vector<2x8x8xbf16>
    "tpu.trace_start"() <{level = 10 : i32, message = "bqd,bkd->bqk"}> : () -> ()
    %cst_18 = arith.constant dense<0.000000e+00> : vector<2x8x8xf32>
    %44 = tpu.matmul %42, %43, %cst_18 {dimension_numbers = #tpu.dot_dimension_numbers<[2], [2], [1], [1], [0, 0, 0, 1, 1, 1], [0], [0]>} : vector<2x8x8xbf16>, vector<2x8x8xbf16>, vector<2x8x8xf32> -> vector<2x8x8xf32>
    "tpu.trace_stop"() : () -> ()
    %cst_19 = arith.constant dense<0xFF800000> : vector<2x8xf32>
    %45 = vector.multi_reduction <maximumf>, %44, %cst_19 [2] : vector<2x8x8xf32> to vector<2x8xf32>
    %46 = vector.shape_cast %45 : vector<2x8xf32> to vector<2x8x1xf32>
    %47 = vector.broadcast %46 : vector<2x8x1xf32> to vector<2x8x8xf32>
    %48 = arith.subf %44, %47 : vector<2x8x8xf32>
    %49 = math.exp %48 : vector<2x8x8xf32>
    %cst_20 = arith.constant dense<0.000000e+00> : vector<2x8xf32>
    %50 = vector.multi_reduction <add>, %49, %cst_20 [2] : vector<2x8x8xf32> to vector<2x8xf32>
    %51 = vector.shape_cast %50 : vector<2x8xf32> to vector<2x8x1xf32>
    %cst_21 = arith.constant 1.000000e+00 : f32
    %52 = vector.broadcast %cst_21 : f32 to vector<2x8x1xf32>
    %53 = arith.divf %52, %51 : vector<2x8x1xf32>
    %54 = vector.broadcast %53 : vector<2x8x1xf32> to vector<2x8x8xf32>
    %55 = arith.mulf %49, %54 : vector<2x8x8xf32>
    %56 = arith.truncf %55 : vector<2x8x8xf32> to vector<2x8x8xbf16>
    %57 = vector.extract_strided_slice %18 {offsets = [0, 0, 8], sizes = [2, 8, 8], strides = [1, 1, 1]} : vector<2x8x32xbf16> to vector<2x8x8xbf16>
    "tpu.trace_start"() <{level = 10 : i32, message = "bqk,bkd->bqd"}> : () -> ()
    %cst_22 = arith.constant dense<0.000000e+00> : vector<2x8x8xf32>
    %58 = tpu.matmul %56, %57, %cst_22 {dimension_numbers = #tpu.dot_dimension_numbers<[2], [1], [1], [2], [0, 0, 0, 1, 1, 2], [0], [0]>} : vector<2x8x8xbf16>, vector<2x8x8xbf16>, vector<2x8x8xf32> -> vector<2x8x8xf32>
    "tpu.trace_stop"() : () -> ()
    %59 = vector.shape_cast %58 : vector<2x8x8xf32> to vector<16x8xf32>
    %60 = arith.truncf %59 : vector<16x8xf32> to vector<16x8xbf16>
    %61 = vector.extract_strided_slice %11 {offsets = [8, 0], sizes = [8, 32], strides = [1, 1]} : vector<32x32xbf16> to vector<8x32xbf16>
    %cst_23 = arith.constant dense<0.000000e+00> : vector<16x32xf32>
    %62 = tpu.matmul %60, %61, %cst_23 {dimension_numbers = #tpu.dot_dimension_numbers<[1], [0], [0], [1], [0, 0, 1, 1], [], []>} : vector<16x8xbf16>, vector<8x32xbf16>, vector<16x32xf32> -> vector<16x32xf32>
    %63 = arith.addf %41, %62 : vector<16x32xf32>
    %64 = vector.extract_strided_slice %14 {offsets = [0, 0, 16], sizes = [2, 8, 8], strides = [1, 1, 1]} : vector<2x8x32xbf16> to vector<2x8x8xbf16>
    %65 = vector.extract_strided_slice %16 {offsets = [0, 0, 16], sizes = [2, 8, 8], strides = [1, 1, 1]} : vector<2x8x32xbf16> to vector<2x8x8xbf16>
    "tpu.trace_start"() <{level = 10 : i32, message = "bqd,bkd->bqk"}> : () -> ()
    %cst_24 = arith.constant dense<0.000000e+00> : vector<2x8x8xf32>
    %66 = tpu.matmul %64, %65, %cst_24 {dimension_numbers = #tpu.dot_dimension_numbers<[2], [2], [1], [1], [0, 0, 0, 1, 1, 1], [0], [0]>} : vector<2x8x8xbf16>, vector<2x8x8xbf16>, vector<2x8x8xf32> -> vector<2x8x8xf32>
    "tpu.trace_stop"() : () -> ()
    %cst_25 = arith.constant dense<0xFF800000> : vector<2x8xf32>
    %67 = vector.multi_reduction <maximumf>, %66, %cst_25 [2] : vector<2x8x8xf32> to vector<2x8xf32>
    %68 = vector.shape_cast %67 : vector<2x8xf32> to vector<2x8x1xf32>
    %69 = vector.broadcast %68 : vector<2x8x1xf32> to vector<2x8x8xf32>
    %70 = arith.subf %66, %69 : vector<2x8x8xf32>
    %71 = math.exp %70 : vector<2x8x8xf32>
    %cst_26 = arith.constant dense<0.000000e+00> : vector<2x8xf32>
    %72 = vector.multi_reduction <add>, %71, %cst_26 [2] : vector<2x8x8xf32> to vector<2x8xf32>
    %73 = vector.shape_cast %72 : vector<2x8xf32> to vector<2x8x1xf32>
    %cst_27 = arith.constant 1.000000e+00 : f32
    %74 = vector.broadcast %cst_27 : f32 to vector<2x8x1xf32>
    %75 = arith.divf %74, %73 : vector<2x8x1xf32>
    %76 = vector.broadcast %75 : vector<2x8x1xf32> to vector<2x8x8xf32>
    %77 = arith.mulf %71, %76 : vector<2x8x8xf32>
    %78 = arith.truncf %77 : vector<2x8x8xf32> to vector<2x8x8xbf16>
    %79 = vector.extract_strided_slice %18 {offsets = [0, 0, 16], sizes = [2, 8, 8], strides = [1, 1, 1]} : vector<2x8x32xbf16> to vector<2x8x8xbf16>
    "tpu.trace_start"() <{level = 10 : i32, message = "bqk,bkd->bqd"}> : () -> ()
    %cst_28 = arith.constant dense<0.000000e+00> : vector<2x8x8xf32>
    %80 = tpu.matmul %78, %79, %cst_28 {dimension_numbers = #tpu.dot_dimension_numbers<[2], [1], [1], [2], [0, 0, 0, 1, 1, 2], [0], [0]>} : vector<2x8x8xbf16>, vector<2x8x8xbf16>, vector<2x8x8xf32> -> vector<2x8x8xf32>
    "tpu.trace_stop"() : () -> ()
    %81 = vector.shape_cast %80 : vector<2x8x8xf32> to vector<16x8xf32>
    %82 = arith.truncf %81 : vector<16x8xf32> to vector<16x8xbf16>
    %83 = vector.extract_strided_slice %11 {offsets = [16, 0], sizes = [8, 32], strides = [1, 1]} : vector<32x32xbf16> to vector<8x32xbf16>
    %cst_29 = arith.constant dense<0.000000e+00> : vector<16x32xf32>
    %84 = tpu.matmul %82, %83, %cst_29 {dimension_numbers = #tpu.dot_dimension_numbers<[1], [0], [0], [1], [0, 0, 1, 1], [], []>} : vector<16x8xbf16>, vector<8x32xbf16>, vector<16x32xf32> -> vector<16x32xf32>
    %85 = arith.addf %63, %84 : vector<16x32xf32>
    %86 = vector.extract_strided_slice %14 {offsets = [0, 0, 24], sizes = [2, 8, 8], strides = [1, 1, 1]} : vector<2x8x32xbf16> to vector<2x8x8xbf16>
    %87 = vector.extract_strided_slice %16 {offsets = [0, 0, 24], sizes = [2, 8, 8], strides = [1, 1, 1]} : vector<2x8x32xbf16> to vector<2x8x8xbf16>
    "tpu.trace_start"() <{level = 10 : i32, message = "bqd,bkd->bqk"}> : () -> ()
    %cst_30 = arith.constant dense<0.000000e+00> : vector<2x8x8xf32>
    %88 = tpu.matmul %86, %87, %cst_30 {dimension_numbers = #tpu.dot_dimension_numbers<[2], [2], [1], [1], [0, 0, 0, 1, 1, 1], [0], [0]>} : vector<2x8x8xbf16>, vector<2x8x8xbf16>, vector<2x8x8xf32> -> vector<2x8x8xf32>
    "tpu.trace_stop"() : () -> ()
    %cst_31 = arith.constant dense<0xFF800000> : vector<2x8xf32>
    %89 = vector.multi_reduction <maximumf>, %88, %cst_31 [2] : vector<2x8x8xf32> to vector<2x8xf32>
    %90 = vector.shape_cast %89 : vector<2x8xf32> to vector<2x8x1xf32>
    %91 = vector.broadcast %90 : vector<2x8x1xf32> to vector<2x8x8xf32>
    %92 = arith.subf %88, %91 : vector<2x8x8xf32>
    %93 = math.exp %92 : vector<2x8x8xf32>
    %cst_32 = arith.constant dense<0.000000e+00> : vector<2x8xf32>
    %94 = vector.multi_reduction <add>, %93, %cst_32 [2] : vector<2x8x8xf32> to vector<2x8xf32>
    %95 = vector.shape_cast %94 : vector<2x8xf32> to vector<2x8x1xf32>
    %cst_33 = arith.constant 1.000000e+00 : f32
    %96 = vector.broadcast %cst_33 : f32 to vector<2x8x1xf32>
    %97 = arith.divf %96, %95 : vector<2x8x1xf32>
    %98 = vector.broadcast %97 : vector<2x8x1xf32> to vector<2x8x8xf32>
    %99 = arith.mulf %93, %98 : vector<2x8x8xf32>
    %100 = arith.truncf %99 : vector<2x8x8xf32> to vector<2x8x8xbf16>
    %101 = vector.extract_strided_slice %18 {offsets = [0, 0, 24], sizes = [2, 8, 8], strides = [1, 1, 1]} : vector<2x8x32xbf16> to vector<2x8x8xbf16>
    "tpu.trace_start"() <{level = 10 : i32, message = "bqk,bkd->bqd"}> : () -> ()
    %cst_34 = arith.constant dense<0.000000e+00> : vector<2x8x8xf32>
    %102 = tpu.matmul %100, %101, %cst_34 {dimension_numbers = #tpu.dot_dimension_numbers<[2], [1], [1], [2], [0, 0, 0, 1, 1, 2], [0], [0]>} : vector<2x8x8xbf16>, vector<2x8x8xbf16>, vector<2x8x8xf32> -> vector<2x8x8xf32>
    "tpu.trace_stop"() : () -> ()
    %103 = vector.shape_cast %102 : vector<2x8x8xf32> to vector<16x8xf32>
    %104 = arith.truncf %103 : vector<16x8xf32> to vector<16x8xbf16>
    %105 = vector.extract_strided_slice %11 {offsets = [24, 0], sizes = [8, 32], strides = [1, 1]} : vector<32x32xbf16> to vector<8x32xbf16>
    %cst_35 = arith.constant dense<0.000000e+00> : vector<16x32xf32>
    %106 = tpu.matmul %104, %105, %cst_35 {dimension_numbers = #tpu.dot_dimension_numbers<[1], [0], [0], [1], [0, 0, 1, 1], [], []>} : vector<16x8xbf16>, vector<8x32xbf16>, vector<16x32xf32> -> vector<16x32xf32>
    %107 = arith.addf %85, %106 : vector<16x32xf32>
    %108 = vector.broadcast %12 : vector<1x32xf32> to vector<16x32xf32>
    %109 = arith.addf %107, %108 : vector<16x32xf32>
    %110 = arith.addf %0, %109 : vector<16x32xf32>
    %c0_36 = arith.constant 0 : index
    %c0_37 = arith.constant 0 : index
    %111 = vector.load %arg16[%c0_36, %c0_37] : memref<1x32xf32, #tpu.memory_space<vmem>>, vector<1x32xf32>
    %c0_38 = arith.constant 0 : index
    %c0_39 = arith.constant 0 : index
    %112 = vector.load %arg17[%c0_38, %c0_39] : memref<1x32xf32, #tpu.memory_space<vmem>>, vector<1x32xf32>
    %cst_40 = arith.constant dense<0.000000e+00> : vector<16xf32>
    %113 = vector.multi_reduction <add>, %110, %cst_40 [1] : vector<16x32xf32> to vector<16xf32>
    %114 = vector.shape_cast %113 : vector<16xf32> to vector<16x1xf32>
    %cst_41 = arith.constant 3.200000e+01 : f32
    %115 = vector.broadcast %cst_41 : f32 to vector<16x1xf32>
    %116 = arith.divf %114, %115 : vector<16x1xf32>
    %117 = vector.broadcast %116 : vector<16x1xf32> to vector<16x32xf32>
    %118 = arith.subf %110, %117 : vector<16x32xf32>
    %119 = arith.mulf %118, %118 : vector<16x32xf32>
    %cst_42 = arith.constant dense<0.000000e+00> : vector<16xf32>
    %120 = vector.multi_reduction <add>, %119, %cst_42 [1] : vector<16x32xf32> to vector<16xf32>
    %121 = vector.shape_cast %120 : vector<16xf32> to vector<16x1xf32>
    %cst_43 = arith.constant 3.200000e+01 : f32
    %122 = vector.broadcast %cst_43 : f32 to vector<16x1xf32>
    %123 = arith.divf %121, %122 : vector<16x1xf32>
    %cst_44 = arith.constant 9.99999974E-6 : f32
    %124 = vector.broadcast %cst_44 : f32 to vector<16x1xf32>
    %125 = arith.addf %123, %124 : vector<16x1xf32>
    %126 = math.rsqrt %125 : vector<16x1xf32>
    %127 = vector.broadcast %126 : vector<16x1xf32> to vector<16x32xf32>
    %128 = arith.mulf %118, %127 : vector<16x32xf32>
    %129 = vector.broadcast %111 : vector<1x32xf32> to vector<16x32xf32>
    %130 = arith.mulf %128, %129 : vector<16x32xf32>
    %131 = vector.broadcast %112 : vector<1x32xf32> to vector<16x32xf32>
    %132 = arith.addf %130, %131 : vector<16x32xf32>
    %133 = arith.truncf %132 : vector<16x32xf32> to vector<16x32xbf16>
    %c0_45 = arith.constant 0 : index
    %c0_46 = arith.constant 0 : index
    %134 = vector.load %arg6[%c0_45, %c0_46] : memref<32x32xbf16, #tpu.memory_space<vmem>>, vector<32x32xbf16>
    %cst_47 = arith.constant dense<0.000000e+00> : vector<16x32xf32>
    %135 = tpu.matmul %133, %134, %cst_47 {dimension_numbers = #tpu.dot_dimension_numbers<[1], [0], [0], [1], [0, 0, 1, 1], [], []>} : vector<16x32xbf16>, vector<32x32xbf16>, vector<16x32xf32> -> vector<16x32xf32>
    %c0_48 = arith.constant 0 : index
    %c0_49 = arith.constant 0 : index
    %136 = vector.load %arg7[%c0_48, %c0_49] : memref<1x32xf32, #tpu.memory_space<vmem>>, vector<1x32xf32>
    %137 = vector.broadcast %136 : vector<1x32xf32> to vector<16x32xf32>
    %138 = arith.addf %135, %137 : vector<16x32xf32>
    %139 = arith.truncf %1 : vector<16x32xf32> to vector<16x32xbf16>
    %c0_50 = arith.constant 0 : index
    %c0_51 = arith.constant 0 : index
    %140 = vector.load %arg8[%c0_50, %c0_51] : memref<32x64xbf16, #tpu.memory_space<vmem>>, vector<32x64xbf16>
    %cst_52 = arith.constant dense<0.000000e+00> : vector<16x64xf32>
    %141 = tpu.matmul %139, %140, %cst_52 {dimension_numbers = #tpu.dot_dimension_numbers<[1], [0], [0], [1], [0, 0, 1, 1], [], []>} : vector<16x32xbf16>, vector<32x64xbf16>, vector<16x64xf32> -> vector<16x64xf32>
    %c0_53 = arith.constant 0 : index
    %c0_54 = arith.constant 0 : index
    %142 = vector.load %arg9[%c0_53, %c0_54] : memref<1x64xf32, #tpu.memory_space<vmem>>, vector<1x64xf32>
    %143 = vector.broadcast %142 : vector<1x64xf32> to vector<16x64xf32>
    %144 = arith.addf %141, %143 : vector<16x64xf32>
    %145 = vector.extract_strided_slice %144 {offsets = [0, 0], sizes = [16, 32], strides = [1, 1]} : vector<16x64xf32> to vector<16x32xf32>
    %146 = vector.extract_strided_slice %144 {offsets = [0, 32], sizes = [16, 32], strides = [1, 1]} : vector<16x64xf32> to vector<16x32xf32>
    %c0_55 = arith.constant 0 : index
    %c0_56 = arith.constant 0 : index
    %147 = vector.load %arg10[%c0_55, %c0_56] : memref<32x32xbf16, #tpu.memory_space<vmem>>, vector<32x32xbf16>
    %c0_57 = arith.constant 0 : index
    %c0_58 = arith.constant 0 : index
    %148 = vector.load %arg11[%c0_57, %c0_58] : memref<1x32xf32, #tpu.memory_space<vmem>>, vector<1x32xf32>
    %149 = vector.shape_cast %138 : vector<16x32xf32> to vector<2x8x32xf32>
    %150 = arith.truncf %149 : vector<2x8x32xf32> to vector<2x8x32xbf16>
    %151 = vector.shape_cast %145 : vector<16x32xf32> to vector<2x8x32xf32>
    %152 = arith.truncf %151 : vector<2x8x32xf32> to vector<2x8x32xbf16>
    %153 = vector.shape_cast %146 : vector<16x32xf32> to vector<2x8x32xf32>
    %154 = arith.truncf %153 : vector<2x8x32xf32> to vector<2x8x32xbf16>
    %cst_59 = arith.constant 0.000000e+00 : f32
    %155 = vector.broadcast %cst_59 : f32 to vector<16x32xf32>
    %156 = vector.extract_strided_slice %150 {offsets = [0, 0, 0], sizes = [2, 8, 8], strides = [1, 1, 1]} : vector<2x8x32xbf16> to vector<2x8x8xbf16>
    %157 = vector.extract_strided_slice %152 {offsets = [0, 0, 0], sizes = [2, 8, 8], strides = [1, 1, 1]} : vector<2x8x32xbf16> to vector<2x8x8xbf16>
    "tpu.trace_start"() <{level = 10 : i32, message = "bqd,bkd->bqk"}> : () -> ()
    %cst_60 = arith.constant dense<0.000000e+00> : vector<2x8x8xf32>
    %158 = tpu.matmul %156, %157, %cst_60 {dimension_numbers = #tpu.dot_dimension_numbers<[2], [2], [1], [1], [0, 0, 0, 1, 1, 1], [0], [0]>} : vector<2x8x8xbf16>, vector<2x8x8xbf16>, vector<2x8x8xf32> -> vector<2x8x8xf32>
    "tpu.trace_stop"() : () -> ()
    %cst_61 = arith.constant dense<0xFF800000> : vector<2x8xf32>
    %159 = vector.multi_reduction <maximumf>, %158, %cst_61 [2] : vector<2x8x8xf32> to vector<2x8xf32>
    %160 = vector.shape_cast %159 : vector<2x8xf32> to vector<2x8x1xf32>
    %161 = vector.broadcast %160 : vector<2x8x1xf32> to vector<2x8x8xf32>
    %162 = arith.subf %158, %161 : vector<2x8x8xf32>
    %163 = math.exp %162 : vector<2x8x8xf32>
    %cst_62 = arith.constant dense<0.000000e+00> : vector<2x8xf32>
    %164 = vector.multi_reduction <add>, %163, %cst_62 [2] : vector<2x8x8xf32> to vector<2x8xf32>
    %165 = vector.shape_cast %164 : vector<2x8xf32> to vector<2x8x1xf32>
    %cst_63 = arith.constant 1.000000e+00 : f32
    %166 = vector.broadcast %cst_63 : f32 to vector<2x8x1xf32>
    %167 = arith.divf %166, %165 : vector<2x8x1xf32>
    %168 = vector.broadcast %167 : vector<2x8x1xf32> to vector<2x8x8xf32>
    %169 = arith.mulf %163, %168 : vector<2x8x8xf32>
    %170 = arith.truncf %169 : vector<2x8x8xf32> to vector<2x8x8xbf16>
    %171 = vector.extract_strided_slice %154 {offsets = [0, 0, 0], sizes = [2, 8, 8], strides = [1, 1, 1]} : vector<2x8x32xbf16> to vector<2x8x8xbf16>
    "tpu.trace_start"() <{level = 10 : i32, message = "bqk,bkd->bqd"}> : () -> ()
    %cst_64 = arith.constant dense<0.000000e+00> : vector<2x8x8xf32>
    %172 = tpu.matmul %170, %171, %cst_64 {dimension_numbers = #tpu.dot_dimension_numbers<[2], [1], [1], [2], [0, 0, 0, 1, 1, 2], [0], [0]>} : vector<2x8x8xbf16>, vector<2x8x8xbf16>, vector<2x8x8xf32> -> vector<2x8x8xf32>
    "tpu.trace_stop"() : () -> ()
    %173 = vector.shape_cast %172 : vector<2x8x8xf32> to vector<16x8xf32>
    %174 = arith.truncf %173 : vector<16x8xf32> to vector<16x8xbf16>
    %175 = vector.extract_strided_slice %147 {offsets = [0, 0], sizes = [8, 32], strides = [1, 1]} : vector<32x32xbf16> to vector<8x32xbf16>
    %cst_65 = arith.constant dense<0.000000e+00> : vector<16x32xf32>
    %176 = tpu.matmul %174, %175, %cst_65 {dimension_numbers = #tpu.dot_dimension_numbers<[1], [0], [0], [1], [0, 0, 1, 1], [], []>} : vector<16x8xbf16>, vector<8x32xbf16>, vector<16x32xf32> -> vector<16x32xf32>
    %177 = arith.addf %155, %176 : vector<16x32xf32>
    %178 = vector.extract_strided_slice %150 {offsets = [0, 0, 8], sizes = [2, 8, 8], strides = [1, 1, 1]} : vector<2x8x32xbf16> to vector<2x8x8xbf16>
    %179 = vector.extract_strided_slice %152 {offsets = [0, 0, 8], sizes = [2, 8, 8], strides = [1, 1, 1]} : vector<2x8x32xbf16> to vector<2x8x8xbf16>
    "tpu.trace_start"() <{level = 10 : i32, message = "bqd,bkd->bqk"}> : () -> ()
    %cst_66 = arith.constant dense<0.000000e+00> : vector<2x8x8xf32>
    %180 = tpu.matmul %178, %179, %cst_66 {dimension_numbers = #tpu.dot_dimension_numbers<[2], [2], [1], [1], [0, 0, 0, 1, 1, 1], [0], [0]>} : vector<2x8x8xbf16>, vector<2x8x8xbf16>, vector<2x8x8xf32> -> vector<2x8x8xf32>
    "tpu.trace_stop"() : () -> ()
    %cst_67 = arith.constant dense<0xFF800000> : vector<2x8xf32>
    %181 = vector.multi_reduction <maximumf>, %180, %cst_67 [2] : vector<2x8x8xf32> to vector<2x8xf32>
    %182 = vector.shape_cast %181 : vector<2x8xf32> to vector<2x8x1xf32>
    %183 = vector.broadcast %182 : vector<2x8x1xf32> to vector<2x8x8xf32>
    %184 = arith.subf %180, %183 : vector<2x8x8xf32>
    %185 = math.exp %184 : vector<2x8x8xf32>
    %cst_68 = arith.constant dense<0.000000e+00> : vector<2x8xf32>
    %186 = vector.multi_reduction <add>, %185, %cst_68 [2] : vector<2x8x8xf32> to vector<2x8xf32>
    %187 = vector.shape_cast %186 : vector<2x8xf32> to vector<2x8x1xf32>
    %cst_69 = arith.constant 1.000000e+00 : f32
    %188 = vector.broadcast %cst_69 : f32 to vector<2x8x1xf32>
    %189 = arith.divf %188, %187 : vector<2x8x1xf32>
    %190 = vector.broadcast %189 : vector<2x8x1xf32> to vector<2x8x8xf32>
    %191 = arith.mulf %185, %190 : vector<2x8x8xf32>
    %192 = arith.truncf %191 : vector<2x8x8xf32> to vector<2x8x8xbf16>
    %193 = vector.extract_strided_slice %154 {offsets = [0, 0, 8], sizes = [2, 8, 8], strides = [1, 1, 1]} : vector<2x8x32xbf16> to vector<2x8x8xbf16>
    "tpu.trace_start"() <{level = 10 : i32, message = "bqk,bkd->bqd"}> : () -> ()
    %cst_70 = arith.constant dense<0.000000e+00> : vector<2x8x8xf32>
    %194 = tpu.matmul %192, %193, %cst_70 {dimension_numbers = #tpu.dot_dimension_numbers<[2], [1], [1], [2], [0, 0, 0, 1, 1, 2], [0], [0]>} : vector<2x8x8xbf16>, vector<2x8x8xbf16>, vector<2x8x8xf32> -> vector<2x8x8xf32>
    "tpu.trace_stop"() : () -> ()
    %195 = vector.shape_cast %194 : vector<2x8x8xf32> to vector<16x8xf32>
    %196 = arith.truncf %195 : vector<16x8xf32> to vector<16x8xbf16>
    %197 = vector.extract_strided_slice %147 {offsets = [8, 0], sizes = [8, 32], strides = [1, 1]} : vector<32x32xbf16> to vector<8x32xbf16>
    %cst_71 = arith.constant dense<0.000000e+00> : vector<16x32xf32>
    %198 = tpu.matmul %196, %197, %cst_71 {dimension_numbers = #tpu.dot_dimension_numbers<[1], [0], [0], [1], [0, 0, 1, 1], [], []>} : vector<16x8xbf16>, vector<8x32xbf16>, vector<16x32xf32> -> vector<16x32xf32>
    %199 = arith.addf %177, %198 : vector<16x32xf32>
    %200 = vector.extract_strided_slice %150 {offsets = [0, 0, 16], sizes = [2, 8, 8], strides = [1, 1, 1]} : vector<2x8x32xbf16> to vector<2x8x8xbf16>
    %201 = vector.extract_strided_slice %152 {offsets = [0, 0, 16], sizes = [2, 8, 8], strides = [1, 1, 1]} : vector<2x8x32xbf16> to vector<2x8x8xbf16>
    "tpu.trace_start"() <{level = 10 : i32, message = "bqd,bkd->bqk"}> : () -> ()
    %cst_72 = arith.constant dense<0.000000e+00> : vector<2x8x8xf32>
    %202 = tpu.matmul %200, %201, %cst_72 {dimension_numbers = #tpu.dot_dimension_numbers<[2], [2], [1], [1], [0, 0, 0, 1, 1, 1], [0], [0]>} : vector<2x8x8xbf16>, vector<2x8x8xbf16>, vector<2x8x8xf32> -> vector<2x8x8xf32>
    "tpu.trace_stop"() : () -> ()
    %cst_73 = arith.constant dense<0xFF800000> : vector<2x8xf32>
    %203 = vector.multi_reduction <maximumf>, %202, %cst_73 [2] : vector<2x8x8xf32> to vector<2x8xf32>
    %204 = vector.shape_cast %203 : vector<2x8xf32> to vector<2x8x1xf32>
    %205 = vector.broadcast %204 : vector<2x8x1xf32> to vector<2x8x8xf32>
    %206 = arith.subf %202, %205 : vector<2x8x8xf32>
    %207 = math.exp %206 : vector<2x8x8xf32>
    %cst_74 = arith.constant dense<0.000000e+00> : vector<2x8xf32>
    %208 = vector.multi_reduction <add>, %207, %cst_74 [2] : vector<2x8x8xf32> to vector<2x8xf32>
    %209 = vector.shape_cast %208 : vector<2x8xf32> to vector<2x8x1xf32>
    %cst_75 = arith.constant 1.000000e+00 : f32
    %210 = vector.broadcast %cst_75 : f32 to vector<2x8x1xf32>
    %211 = arith.divf %210, %209 : vector<2x8x1xf32>
    %212 = vector.broadcast %211 : vector<2x8x1xf32> to vector<2x8x8xf32>
    %213 = arith.mulf %207, %212 : vector<2x8x8xf32>
    %214 = arith.truncf %213 : vector<2x8x8xf32> to vector<2x8x8xbf16>
    %215 = vector.extract_strided_slice %154 {offsets = [0, 0, 16], sizes = [2, 8, 8], strides = [1, 1, 1]} : vector<2x8x32xbf16> to vector<2x8x8xbf16>
    "tpu.trace_start"() <{level = 10 : i32, message = "bqk,bkd->bqd"}> : () -> ()
    %cst_76 = arith.constant dense<0.000000e+00> : vector<2x8x8xf32>
    %216 = tpu.matmul %214, %215, %cst_76 {dimension_numbers = #tpu.dot_dimension_numbers<[2], [1], [1], [2], [0, 0, 0, 1, 1, 2], [0], [0]>} : vector<2x8x8xbf16>, vector<2x8x8xbf16>, vector<2x8x8xf32> -> vector<2x8x8xf32>
    "tpu.trace_stop"() : () -> ()
    %217 = vector.shape_cast %216 : vector<2x8x8xf32> to vector<16x8xf32>
    %218 = arith.truncf %217 : vector<16x8xf32> to vector<16x8xbf16>
    %219 = vector.extract_strided_slice %147 {offsets = [16, 0], sizes = [8, 32], strides = [1, 1]} : vector<32x32xbf16> to vector<8x32xbf16>
    %cst_77 = arith.constant dense<0.000000e+00> : vector<16x32xf32>
    %220 = tpu.matmul %218, %219, %cst_77 {dimension_numbers = #tpu.dot_dimension_numbers<[1], [0], [0], [1], [0, 0, 1, 1], [], []>} : vector<16x8xbf16>, vector<8x32xbf16>, vector<16x32xf32> -> vector<16x32xf32>
    %221 = arith.addf %199, %220 : vector<16x32xf32>
    %222 = vector.extract_strided_slice %150 {offsets = [0, 0, 24], sizes = [2, 8, 8], strides = [1, 1, 1]} : vector<2x8x32xbf16> to vector<2x8x8xbf16>
    %223 = vector.extract_strided_slice %152 {offsets = [0, 0, 24], sizes = [2, 8, 8], strides = [1, 1, 1]} : vector<2x8x32xbf16> to vector<2x8x8xbf16>
    "tpu.trace_start"() <{level = 10 : i32, message = "bqd,bkd->bqk"}> : () -> ()
    %cst_78 = arith.constant dense<0.000000e+00> : vector<2x8x8xf32>
    %224 = tpu.matmul %222, %223, %cst_78 {dimension_numbers = #tpu.dot_dimension_numbers<[2], [2], [1], [1], [0, 0, 0, 1, 1, 1], [0], [0]>} : vector<2x8x8xbf16>, vector<2x8x8xbf16>, vector<2x8x8xf32> -> vector<2x8x8xf32>
    "tpu.trace_stop"() : () -> ()
    %cst_79 = arith.constant dense<0xFF800000> : vector<2x8xf32>
    %225 = vector.multi_reduction <maximumf>, %224, %cst_79 [2] : vector<2x8x8xf32> to vector<2x8xf32>
    %226 = vector.shape_cast %225 : vector<2x8xf32> to vector<2x8x1xf32>
    %227 = vector.broadcast %226 : vector<2x8x1xf32> to vector<2x8x8xf32>
    %228 = arith.subf %224, %227 : vector<2x8x8xf32>
    %229 = math.exp %228 : vector<2x8x8xf32>
    %cst_80 = arith.constant dense<0.000000e+00> : vector<2x8xf32>
    %230 = vector.multi_reduction <add>, %229, %cst_80 [2] : vector<2x8x8xf32> to vector<2x8xf32>
    %231 = vector.shape_cast %230 : vector<2x8xf32> to vector<2x8x1xf32>
    %cst_81 = arith.constant 1.000000e+00 : f32
    %232 = vector.broadcast %cst_81 : f32 to vector<2x8x1xf32>
    %233 = arith.divf %232, %231 : vector<2x8x1xf32>
    %234 = vector.broadcast %233 : vector<2x8x1xf32> to vector<2x8x8xf32>
    %235 = arith.mulf %229, %234 : vector<2x8x8xf32>
    %236 = arith.truncf %235 : vector<2x8x8xf32> to vector<2x8x8xbf16>
    %237 = vector.extract_strided_slice %154 {offsets = [0, 0, 24], sizes = [2, 8, 8], strides = [1, 1, 1]} : vector<2x8x32xbf16> to vector<2x8x8xbf16>
    "tpu.trace_start"() <{level = 10 : i32, message = "bqk,bkd->bqd"}> : () -> ()
    %cst_82 = arith.constant dense<0.000000e+00> : vector<2x8x8xf32>
    %238 = tpu.matmul %236, %237, %cst_82 {dimension_numbers = #tpu.dot_dimension_numbers<[2], [1], [1], [2], [0, 0, 0, 1, 1, 2], [0], [0]>} : vector<2x8x8xbf16>, vector<2x8x8xbf16>, vector<2x8x8xf32> -> vector<2x8x8xf32>
    "tpu.trace_stop"() : () -> ()
    %239 = vector.shape_cast %238 : vector<2x8x8xf32> to vector<16x8xf32>
    %240 = arith.truncf %239 : vector<16x8xf32> to vector<16x8xbf16>
    %241 = vector.extract_strided_slice %147 {offsets = [24, 0], sizes = [8, 32], strides = [1, 1]} : vector<32x32xbf16> to vector<8x32xbf16>
    %cst_83 = arith.constant dense<0.000000e+00> : vector<16x32xf32>
    %242 = tpu.matmul %240, %241, %cst_83 {dimension_numbers = #tpu.dot_dimension_numbers<[1], [0], [0], [1], [0, 0, 1, 1], [], []>} : vector<16x8xbf16>, vector<8x32xbf16>, vector<16x32xf32> -> vector<16x32xf32>
    %243 = arith.addf %221, %242 : vector<16x32xf32>
    %244 = vector.broadcast %148 : vector<1x32xf32> to vector<16x32xf32>
    %245 = arith.addf %243, %244 : vector<16x32xf32>
    %246 = arith.addf %132, %245 : vector<16x32xf32>
    %c0_84 = arith.constant 0 : index
    %c0_85 = arith.constant 0 : index
    %247 = vector.load %arg18[%c0_84, %c0_85] : memref<1x32xf32, #tpu.memory_space<vmem>>, vector<1x32xf32>
    %c0_86 = arith.constant 0 : index
    %c0_87 = arith.constant 0 : index
    %248 = vector.load %arg19[%c0_86, %c0_87] : memref<1x32xf32, #tpu.memory_space<vmem>>, vector<1x32xf32>
    %cst_88 = arith.constant dense<0.000000e+00> : vector<16xf32>
    %249 = vector.multi_reduction <add>, %246, %cst_88 [1] : vector<16x32xf32> to vector<16xf32>
    %250 = vector.shape_cast %249 : vector<16xf32> to vector<16x1xf32>
    %cst_89 = arith.constant 3.200000e+01 : f32
    %251 = vector.broadcast %cst_89 : f32 to vector<16x1xf32>
    %252 = arith.divf %250, %251 : vector<16x1xf32>
    %253 = vector.broadcast %252 : vector<16x1xf32> to vector<16x32xf32>
    %254 = arith.subf %246, %253 : vector<16x32xf32>
    %255 = arith.mulf %254, %254 : vector<16x32xf32>
    %cst_90 = arith.constant dense<0.000000e+00> : vector<16xf32>
    %256 = vector.multi_reduction <add>, %255, %cst_90 [1] : vector<16x32xf32> to vector<16xf32>
    %257 = vector.shape_cast %256 : vector<16xf32> to vector<16x1xf32>
    %cst_91 = arith.constant 3.200000e+01 : f32
    %258 = vector.broadcast %cst_91 : f32 to vector<16x1xf32>
    %259 = arith.divf %257, %258 : vector<16x1xf32>
    %cst_92 = arith.constant 9.99999974E-6 : f32
    %260 = vector.broadcast %cst_92 : f32 to vector<16x1xf32>
    %261 = arith.addf %259, %260 : vector<16x1xf32>
    %262 = math.rsqrt %261 : vector<16x1xf32>
    %263 = vector.broadcast %262 : vector<16x1xf32> to vector<16x32xf32>
    %264 = arith.mulf %254, %263 : vector<16x32xf32>
    %265 = vector.broadcast %247 : vector<1x32xf32> to vector<16x32xf32>
    %266 = arith.mulf %264, %265 : vector<16x32xf32>
    %267 = vector.broadcast %248 : vector<1x32xf32> to vector<16x32xf32>
    %268 = arith.addf %266, %267 : vector<16x32xf32>
    %269 = arith.truncf %268 : vector<16x32xf32> to vector<16x32xbf16>
    %c0_93 = arith.constant 0 : index
    %c0_94 = arith.constant 0 : index
    %270 = vector.load %arg12[%c0_93, %c0_94] : memref<32x64xbf16, #tpu.memory_space<vmem>>, vector<32x64xbf16>
    %cst_95 = arith.constant dense<0.000000e+00> : vector<16x64xf32>
    %271 = tpu.matmul %269, %270, %cst_95 {dimension_numbers = #tpu.dot_dimension_numbers<[1], [0], [0], [1], [0, 0, 1, 1], [], []>} : vector<16x32xbf16>, vector<32x64xbf16>, vector<16x64xf32> -> vector<16x64xf32>
    %c0_96 = arith.constant 0 : index
    %c0_97 = arith.constant 0 : index
    %272 = vector.load %arg13[%c0_96, %c0_97] : memref<1x64xf32, #tpu.memory_space<vmem>>, vector<1x64xf32>
    %273 = vector.broadcast %272 : vector<1x64xf32> to vector<16x64xf32>
    %274 = arith.addf %271, %273 : vector<16x64xf32>
    %cst_98 = arith.constant 0.000000e+00 : f32
    %275 = vector.broadcast %cst_98 : f32 to vector<16x64xf32>
    %276 = arith.maximumf %274, %275 : vector<16x64xf32>
    %277 = arith.truncf %276 : vector<16x64xf32> to vector<16x64xbf16>
    %c0_99 = arith.constant 0 : index
    %c0_100 = arith.constant 0 : index
    %278 = vector.load %arg14[%c0_99, %c0_100] : memref<64x32xbf16, #tpu.memory_space<vmem>>, vector<64x32xbf16>
    %cst_101 = arith.constant dense<0.000000e+00> : vector<16x32xf32>
    %279 = tpu.matmul %277, %278, %cst_101 {dimension_numbers = #tpu.dot_dimension_numbers<[1], [0], [0], [1], [0, 0, 1, 1], [], []>} : vector<16x64xbf16>, vector<64x32xbf16>, vector<16x32xf32> -> vector<16x32xf32>
    %c0_102 = arith.constant 0 : index
    %c0_103 = arith.constant 0 : index
    %280 = vector.load %arg15[%c0_102, %c0_103] : memref<1x32xf32, #tpu.memory_space<vmem>>, vector<1x32xf32>
    %281 = vector.broadcast %280 : vector<1x32xf32> to vector<16x32xf32>
    %282 = arith.addf %279, %281 : vector<16x32xf32>
    %283 = arith.addf %268, %282 : vector<16x32xf32>
    %c0_104 = arith.constant 0 : index
    %c0_105 = arith.constant 0 : index
    %284 = vector.load %arg20[%c0_104, %c0_105] : memref<1x32xf32, #tpu.memory_space<vmem>>, vector<1x32xf32>
    %c0_106 = arith.constant 0 : index
    %c0_107 = arith.constant 0 : index
    %285 = vector.load %arg21[%c0_106, %c0_107] : memref<1x32xf32, #tpu.memory_space<vmem>>, vector<1x32xf32>
    %cst_108 = arith.constant dense<0.000000e+00> : vector<16xf32>
    %286 = vector.multi_reduction <add>, %283, %cst_108 [1] : vector<16x32xf32> to vector<16xf32>
    %287 = vector.shape_cast %286 : vector<16xf32> to vector<16x1xf32>
    %cst_109 = arith.constant 3.200000e+01 : f32
    %288 = vector.broadcast %cst_109 : f32 to vector<16x1xf32>
    %289 = arith.divf %287, %288 : vector<16x1xf32>
    %290 = vector.broadcast %289 : vector<16x1xf32> to vector<16x32xf32>
    %291 = arith.subf %283, %290 : vector<16x32xf32>
    %292 = arith.mulf %291, %291 : vector<16x32xf32>
    %cst_110 = arith.constant dense<0.000000e+00> : vector<16xf32>
    %293 = vector.multi_reduction <add>, %292, %cst_110 [1] : vector<16x32xf32> to vector<16xf32>
    %294 = vector.shape_cast %293 : vector<16xf32> to vector<16x1xf32>
    %cst_111 = arith.constant 3.200000e+01 : f32
    %295 = vector.broadcast %cst_111 : f32 to vector<16x1xf32>
    %296 = arith.divf %294, %295 : vector<16x1xf32>
    %cst_112 = arith.constant 9.99999974E-6 : f32
    %297 = vector.broadcast %cst_112 : f32 to vector<16x1xf32>
    %298 = arith.addf %296, %297 : vector<16x1xf32>
    %299 = math.rsqrt %298 : vector<16x1xf32>
    %300 = vector.broadcast %299 : vector<16x1xf32> to vector<16x32xf32>
    %301 = arith.mulf %291, %300 : vector<16x32xf32>
    %302 = vector.broadcast %284 : vector<1x32xf32> to vector<16x32xf32>
    %303 = arith.mulf %301, %302 : vector<16x32xf32>
    %304 = vector.broadcast %285 : vector<1x32xf32> to vector<16x32xf32>
    %305 = arith.addf %303, %304 : vector<16x32xf32>
    %c0_113 = arith.constant 0 : index
    %c0_114 = arith.constant 0 : index
    %306 = vector.load %arg22[%c0_113, %c0_114] : memref<16x32xf32, #tpu.memory_space<vmem>>, vector<16x32xf32>
    tpu.vector_store %arg22[%c0_113, %c0_114], %305 {strides = array<i32>} : memref<16x32xf32, #tpu.memory_space<vmem>>, vector<16x32xf32>,
    return
  }
}

</mosaic_0001>

<bundles_post_ra>
// kernel: tpu_custom_call.1
= control target key start
LH: loop header
LB: loop body
LE: loop exit
PB: predicated region body
PF: predicated region fallthrough
CT: control target
= control target key end

     0   :  { %s2796_s0 = inlined_call_operand.vmem [shape: f32[16,32], index: 0, kind: input, shape index: {}]   ;;  %s2797_s1 = inlined_call_operand.vmem [shape: f32[16,32], index: 1, kind: input, shape index: {}]   ;;  %s2798_s2 = inlined_call_operand.vmem [shape: bf16[32,96], index: 2, kind: input, shape index: {}]   ;;  %s2799_s3 = inlined_call_operand.vmem [shape: f32[1,96], index: 3, kind: input, shape index: {}]   ;;  %s2800_s4 = inlined_call_operand.hbm [shape: bf16[32,32], index: 4, kind: input, shape index: {}]   ;;  %s2801_s5 = inlined_call_operand.vmem [shape: f32[1,32], index: 5, kind: input, shape index: {}]   ;;  %s2802_s6 = inlined_call_operand.hbm [shape: bf16[32,32], index: 6, kind: input, shape index: {}]   ;;  %s2803_s7 = inlined_call_operand.vmem [shape: f32[1,32], index: 7, kind: input, shape index: {}]   ;;  %s2804_s8 = inlined_call_operand.hbm [shape: bf16[32,64], index: 8, kind: input, shape index: {}]   ;;  %s2805_s9 = inlined_call_operand.vmem [shape: f32[1,64], index: 9, kind: input, shape index: {}]   ;;  %s2806_s10 = inlined_call_operand.hbm [shape: bf16[32,32], index: 10, kind: input, shape index: {}]   ;;  %s2807_s11 = inlined_call_operand.vmem [shape: f32[1,32], index: 11, kind: input, shape index: {}]   ;;  %s2808_s12 = inlined_call_operand.hbm [shape: bf16[32,64], index: 12, kind: input, shape index: {}]   ;;  %s2809_s13 = inlined_call_operand.vmem [shape: f32[1,64], index: 13, kind: input, shape index: {}]   ;;  %s2810_s14 = inlined_call_operand.vmem [shape: bf16[64,32], index: 14, kind: input, shape index: {}]   ;;  %s2811_s15 = inlined_call_operand.vmem [shape: f32[1,32], index: 15, kind: input, shape index: {}]   ;;  %s2812_s16 = inlined_call_operand.vmem [shape: f32[1,32], index: 16, kind: input, shape index: {}]   ;;  %s2813_s17 = inlined_call_operand.vmem [shape: f32[1,32], index: 17, kind: input, shape index: {}]   ;;  %s2814_s18 = inlined_call_operand.vmem [shape: f32[1,32], index: 18, kind: input, shape index: {}]   ;;  %s2815_s19 = inlined_call_operand.vmem [shape: f32[1,32], index: 19, kind: input, shape index: {}]   ;;  %s2816_s20 = inlined_call_operand.vmem [shape: f32[1,32], index: 20, kind: input, shape index: {}]   ;;  %s2817_s21 = inlined_call_operand.vmem [shape: f32[1,32], index: 21, kind: input, shape index: {}]   ;;  %s2818_s22 = inlined_call_operand.hbm [shape: f32[16,32], index: 22, kind: output, shape index: {}]  }
   0x1   :  { %2822 = sst [smem:[#allocation16_spill]] %s2796_s0 }
   0x2   :  { %2823 = sst [smem:[#allocation17_spill]] %s2797_s1 }
   0x3   :  { %2824 = sst [smem:[#allocation18_spill]] %s2798_s2 }
   0x4   :  { %2825 = sst [smem:[#allocation19_spill]] %s2799_s3 }
   0x5   :  { %2826 = sst [smem:[#allocation20_spill]] %s2800_s4 }
   0x6   :  { %2827 = sst [smem:[#allocation21_spill]] %s2801_s5 }
   0x7   :  { %2828 = sst [smem:[#allocation22_spill]] %s2802_s6 }
   0x8   :  { %27 = vsyncpa [#allocation3], 0 }
   0x9   :  { %28 = vsyncpa [#allocation6], 0 }
   0xa   :  { %29 = vsyncpa [#allocation9], 0 }
   0xb   :  { %30 = vsyncpa [#allocation4], 0  ;;  %s2829_s29 = sld [smem:[#allocation22_spill]]  ;;  %s2268_s4 = smov [#allocation5]  }
   0xc   :  { %s60_s0 = sshll.u32 %s2268_s4, 4  ;;  %s88_s5 = sshll.u32 %s2806_s10, 4  ;;  %s61_s0 = int_to_ptr.vmem [resolvable:$true] %s60_s0  ;;  %s89_s5 = int_to_ptr.hbm [resolvable:$true] %s88_s5 }
   0xd   :  { %s2269_s24 = smov 64   ;;  %s2270_s6 = smov 4  }
   0xe   :  { %s2271_s25 = smov [#allocation8]   ;;  %s2830_s3 = sld [smem:[#allocation20_spill]] }
   0xf   :  { %s90_s26 = sshll.u32 %s2271_s25, 4  ;;  %s73_s10 = sshll.u32 %s2804_s8, 4  ;;  %s91_s26 = int_to_ptr.vmem [resolvable:$true] %s90_s26  ;;  %s74_s10 = int_to_ptr.hbm [resolvable:$true] %s73_s10 }
  0x10   :  { %96 = dma.hbm_to_vmem [thread:$0]  %s89_s5, 256, %s91_s26, [#allocation9], %s2269_s24, %s2269_s24, %s2270_s6  }
  0x11   :  { %s58_s30 = sshll.u32 %s2829_s29, 4  ;;  %s2272_s23 = smov [#allocation2]   ;;  %s59_s30 = int_to_ptr.hbm [resolvable:$true] %s58_s30 }
  0x12   :  { %66 = dma.hbm_to_vmem [thread:$0]  %s59_s30, 256, %s61_s0, [#allocation6], %s2269_s24, %s2269_s24, %s2270_s6  }
  0x13   :  { %s45_s1 = sshll.u32 %s2272_s23, 4  ;;  %s2273_s30 = smov [#allocation7]   ;;  %s46_s1 = int_to_ptr.vmem [resolvable:$true] %s45_s1 }
  0x14   :  { %s43_s28 = sshll.u32 %s2830_s3, 4  ;;  %s75_s0 = sshll.u32 %s2273_s30, 4  ;;  %s44_s28 = int_to_ptr.hbm [resolvable:$true] %s43_s28  ;;  %s76_s0 = int_to_ptr.vmem [resolvable:$true] %s75_s0 }
  0x15   :  { %51 = dma.hbm_to_vmem [thread:$0]  %s44_s28, 256, %s46_s1, [#allocation3], %s2269_s24, %s2269_s24, %s2270_s6  }
  0x16   :  { %s103_s27 = sshll.u32 %s2808_s12, 4  ;;  %s2274_s5 = smov [#allocation10]   ;;  %s104_s27 = int_to_ptr.hbm [resolvable:$true] %s103_s27 }
  0x17   :  { %81 = dma.hbm_to_vmem [thread:$0]  %s74_s10, 256, %s76_s0, [#allocation6], %s2269_s24, %s2269_s24, %s2270_s6  }
  0x18   :  { %s105_s8 = sshll.u32 %s2274_s5, 4  ;;  %s106_s8 = int_to_ptr.vmem [resolvable:$true] %s105_s8 }
  0x19   :  { %111 = dma.hbm_to_vmem [thread:$0]  %s104_s27, 256, %s106_s8, [#allocation9], %s2269_s24, %s2269_s24, %s2270_s6  }
  0x1a   :  { %2260 = dma.done.wait [#allocation3], 256  }
  0x1b   :  { %2261 = vsyncadd [#allocation3], 4294967040 }
  0x1c   :  { %2262 = dma.done.wait [#allocation6], 512  }
  0x1d   :  { %2263 = vsyncadd [#allocation6], 4294966784 }
  0x1e   :  { %2264 = dma.done.wait [#allocation9], 512  }
  0x1f   :  { %2265 = vsyncadd [#allocation9], 4294966784  ;;  %s2831_s12 = sld [smem:[#allocation18_spill]]  ;;  %vm176_vm0 = vcmask 261120   ;;  %s2275_s2 = smov 96   ;;  %vm206_vm1 = vcmask 64512  }
  0x20   :  { %s2832_s23 = sld [smem:[#allocation16_spill]]  ;;  %s2276_s27 = smov 88   ;;  %vm307_vm2 = vcmask 1043456  }
  0x21   :  { %s2833_s25 = sld [smem:[#allocation19_spill]]  ;;  %s2277_s5 = smov 120  }
  0x22   :  { %s2278_s8 = smov 56   ;;  %s2279_s26 = smov 80  }
  0x23   :  { %s2280_s3 = smov 112   ;;  %s2282_s28 = smov 72  }
  0x24   :  { %s2283_s29 = smov 104   ;;  %s2835_s30 = sld [smem:[#allocation17_spill]] }
  0x25   :  { %v1993_v0 = vld [vmem:[%s2831_s12 + $0x8] sm:$0xff]  ;;  %v1992_v1 = vld [vmem:[%s2831_s12] sm:$0xff]  ;;  %s2281_s12 = smov 48   ;;  %s1884_s10 = sshll.u32 %s2818_s22, 4  ;;  %s1885_s10 = int_to_ptr.hbm [resolvable:$true] %s1884_s10 }
  0x26   :  { %v2438_v2 = vld [vmem:[%s2832_s23] sm:$0xff]  ;;  %v2443_v3 = vld [vmem:[%s2832_s23 + $0x8] sm:$0xff]  ;;  %186 = vmatpush.bf16.msra.mxu0 %v1993_v0  ;;  %s2834_s23 = sld [smem:[#allocation21_spill]] }
  0x27   :  { %v155_v4 = vpack.c.bf16 %v2443_v3, %v2438_v2  ;;  %v2025_v5 = vld [vmem:[%s2833_s25] ss:$0 sm:$0xff]  ;;  %v195_v0 = vld [vmem:[#allocation2 + $0x4] sm:$0xf] }
  0x2a   :  { %187 = vmatpush.bf16.msra.mxu0 %v1992_v1 }
  0x2d   :  { %1907 = vmatmul.msk.bf16.vlgmr.msra.gmra.mxu0 %vm176_vm0, %v155_v4  ;;  %v491_v4 = vsel %vm307_vm2, %v195_v0, 0 }
  0xaa   :  { %v189_v6 = vpop.f32.mrf.mxu0 }
  0xab   :  { %v190_v7 = vadd.f32 %v2025_v5, %v189_v6 }
  0xad   :  { %v199_v8 = vpack.c.bf16 %v190_v7, %v190_v7 }
  0xaf   :  { %v202_v9 = vunpack.c.l.b16 %v199_v8 }
  0xb1   :  { %v2451_v10 = vpack.c.b16 %v202_v9, %v202_v9 }
  0xb2   :  { %v191_v11 = vpop.f32.mrf.mxu0 }
  0xb3   :  { %v192_v12 = vadd.f32 %v2025_v5, %v191_v11  ;;  %204 = vrot.lane.b32.xlu1 %v2451_v10, %s2275_s2  ;;  %348 = vrot.lane.b32.xlu0 %v2451_v10, %s2276_s27 }
  0xb5   :  { %v200_v13 = vpack.c.bf16 %v192_v12, %v192_v12 }
  0xb7   :  { %v227_v14 = vunpack.c.l.b16 %v200_v13 }
  0xb9   :  { %v2457_v15 = vpack.c.b16 %v227_v14, %v227_v14 }
  0xbb   :  { %371 = vrot.lane.b32.xlu2 %v2457_v15, %s2276_s27  ;;  %229 = vrot.lane.b32.xlu1 %v2457_v15, %s2275_s2 }
  0xbc   :  { %346 = vrot.lane.b32.xlu0 %v2451_v10, %s2277_s5 }
  0xc3   :  { %369 = vrot.lane.b32.xlu2 %v2457_v15, %s2277_s5 }
  0xcb   :  { %444 = vrot.lane.b32.xlu2 %v2451_v10, %s2278_s8 }
 0x115   :  { %v372_v16 = vpop.permute.xlu2 %371 }
 0x116   :  { %v377_v22 = vsel %vm206_vm1, %v372_v16, 0 }
 0x11d   :  { %v370_v17 = vpop.permute.xlu2 %369 }
 0x125   :  { %v205_v18 = vpop.permute.xlu1 %204  ;;  %v349_v19 = vpop.permute.xlu0 %348 }
 0x126   :  { %v211_v20 = vsel %vm206_vm1, %v205_v18, 0  ;;  %v354_v21 = vsel %vm206_vm1, %v349_v19, 0  ;;  %v445_v23 = vpop.permute.xlu2 %444 }
 0x127   :  { %220 = vmatpush.bf16.xpose.msra.mxu1 %v211_v20  ;;  %363 = vmatpush.bf16.xpose.msrb.mxu0 %v354_v21  ;;  %v450_v27 = vsel %vm307_vm2, %v445_v23, 0 }
 0x12d   :  { %v230_v24 = vpop.permute.xlu1 %229 }
 0x12e   :  { %v347_v25 = vpop.permute.xlu0 %346  ;;  %1908 = vmatmul.msk.bf16.vlgmr.msra.gmra.mxu1 %vm206_vm1, %v199_v8  ;;  %v235_v26 = vsel %vm206_vm1, %v230_v24, 0 }
 0x12f   :  { %386 = vmatpush.bf16.xpose.msrb.mxu1 %v377_v22  ;;  %1912 = vmatmul.msk.bf16.vlgmr.msrb.gmra.mxu0 %vm206_vm1, %v347_v25 }
 0x130   :  { %244 = vmatpush.bf16.xpose.msra.mxu2 %v235_v26  ;;  %500 = vmatpush.bf16.msra.mxu0 %v491_v4 }
 0x137   :  { %1909 = vmatmul.msk.bf16.vlgmr.msra.gmra.mxu2 %vm206_vm1, %v200_v13 }
 0x138   :  { %459 = vmatpush.bf16.msrb.mxu2 %v450_v27 }
 0x13e   :  { %1913 = vmatmul.msk.bf16.vlgmr.msrb.gmra.mxu1 %vm206_vm1, %v370_v17 }
 0x1ab   :  { %v222_v28 = vpop.f32.mrf.mxu1 }
 0x1ac   :  { %v365_v29 = vpop.f32.mrf.mxu0  ;;  %v250_v30 = vsel %vm206_vm1, %v222_v28, -inf }
 0x1ad   :  { %251 = vmax.xlane.f32.xlu2 %v250_v30  ;;  %v392_v31 = vsel %vm206_vm1, %v365_v29, -inf }
 0x1ae   :  { %393 = vmax.xlane.f32.xlu0 %v392_v31 }
 0x1b3   :  { %v224_v32 = vpop.f32.mrf.mxu1 }
 0x1b4   :  { %v367_v33 = vpop.f32.mrf.mxu0 }
 0x1ba   :  { %v246_v34 = vpop.f32.mrf.mxu2 }
 0x1bb   :  { %v253_v35 = vsel %vm206_vm1, %v246_v34, -inf  ;;  %v388_v36 = vpop.f32.mrf.mxu1 }
 0x1bc   :  { %254 = vmax.xlane.f32.xlu2 %v253_v35  ;;  %v395_v38 = vsel %vm206_vm1, %v388_v36, -inf }
 0x1c2   :  { %v248_v37 = vpop.f32.mrf.mxu2  ;;  %529 = vrot.lane.b32.xlu0 %v2451_v10, %s2279_s26 }
 0x1c3   :  { %v390_v39 = vpop.f32.mrf.mxu1 }
 0x1c4   :  { %396 = vmax.xlane.f32.xlu2 %v395_v38 }
 0x220   :  { %v252_v40 = vpop.xlane.xlu2 %251 }
 0x221   :  { %v256_v41 = vsub.f32 %v222_v28, %v252_v40  ;;  %v394_v42 = vpop.xlane.xlu0 %393 }
 0x222   :  { %v398_v43 = vsub.f32 %v365_v29, %v394_v42 }
 0x223   :  { %v258_v44 = vmul.f32 1.442695, %v256_v41 }
 0x224   :  { %v400_v45 = vmul.f32 1.442695, %v398_v43 }
 0x225   :  { %2038 = vpow2.f32 %v258_v44 }
 0x226   :  { %2040 = vpow2.f32 %v400_v45 }
 0x22b   :  { %v2484_v46 = vpop.eup %2038 }
 0x22c   :  { %v2486_v47 = vpop.eup %2040  ;;  %v262_v48 = vsel %vm206_vm1, %v2484_v46, 0.0 }
 0x22d   :  { %263 = vadd.xlane.f32.xlu0 %v262_v48  ;;  %v404_v49 = vsel %vm206_vm1, %v2486_v47, 0.0 }
 0x22e   :  { %405 = vadd.xlane.f32.xlu1 %v404_v49 }
 0x22f   :  { %v255_v50 = vpop.xlane.xlu2 %254 }
 0x230   :  { %v257_v51 = vsub.f32 %v246_v34, %v255_v50 }
 0x232   :  { %v260_v52 = vmul.f32 1.442695, %v257_v51 }
 0x234   :  { %2042 = vpow2.f32 %v260_v52  ;;  %v530_v53 = vpop.permute.xlu0 %529 }
 0x235   :  { %v535_v54 = vsel %vm206_vm1, %v530_v53, 0 }
 0x236   :  { %544 = vmatpush.bf16.xpose.msra.mxu2 %v535_v54 }
 0x237   :  { %v397_v55 = vpop.xlane.xlu2 %396 }
 0x238   :  { %v399_v56 = vsub.f32 %v388_v36, %v397_v55 }
 0x23a   :  { %v2493_v57 = vpop.eup %2042  ;;  %v402_v58 = vmul.f32 1.442695, %v399_v56 }
 0x23b   :  { %v265_v59 = vsel %vm206_vm1, %v2493_v57, 0.0 }
 0x23c   :  { %2044 = vpow2.f32 %v402_v58  ;;  %266 = vadd.xlane.f32.xlu2 %v265_v59 }
 0x242   :  { %v2497_v60 = vpop.eup %2044 }
 0x243   :  { %v407_v61 = vsel %vm206_vm1, %v2497_v60, 0.0 }
 0x244   :  { %408 = vadd.xlane.f32.xlu2 %v407_v61 }
 0x247   :  { %527 = vrot.lane.b32.xlu1 %v2451_v10, %s2280_s3 }
 0x24f   :  { %302 = vrot.lane.b32.xlu1 %v2451_v10, %s2269_s24 }
 0x257   :  { %324 = vrot.lane.b32.xlu1 %v2457_v15, %s2269_s24  ;;  %s2284_s24 = smov 40  }
 0x25c   :  { %465 = vrot.lane.b32.xlu2 %v2457_v15, %s2278_s8 }
 0x25f   :  { %552 = vrot.lane.b32.xlu1 %v2457_v15, %s2279_s26 }
 0x264   :  { %625 = vrot.lane.b32.xlu2 %v2451_v10, %s2281_s12 }
 0x267   :  { %550 = vrot.lane.b32.xlu1 %v2457_v15, %s2280_s3 }
 0x26c   :  { %715 = vrot.lane.b32.xlu2 %v2457_v15, %s2282_s28 }
 0x274   :  { %690 = vrot.lane.b32.xlu2 %v2451_v10, %s2283_s29 }
 0x27c   :  { %713 = vrot.lane.b32.xlu2 %v2457_v15, %s2283_s29 }
 0x2a0   :  { %v264_v62 = vpop.xlane.xlu0 %263 }
 0x2a1   :  { %v406_v63 = vpop.xlane.xlu1 %405  ;;  %2046 = vrcp.f32 %v264_v62  ;;  %v279_v26 = vand.u32 2147483648, %v264_v62  ;;  %vm273_vm8 = vweird.f32 %v264_v62  ;;  %v277_v27 = vand.u32 2147483647, %v264_v62 }
 0x2a2   :  { %2048 = vrcp.f32 %v406_v63  ;;  %v421_v9 = vand.u32 2147483648, %v406_v63  ;;  %v419_v12 = vand.u32 2147483647, %v406_v63  ;;  %vm415_vm4 = vweird.f32 %v406_v63 }
 0x2a3   :  { %v280_v31 = vor.u32 1.1754944e-38, %v279_v26  ;;  %vm278_vm10 = vcmp.eq.f32.partialorder %v277_v27, 8.507059e+37 }
 0x2a4   :  { %v422_v17 = vor.u32 1.1754944e-38, %v421_v9  ;;  %vm420_vm6 = vcmp.eq.f32.partialorder %v419_v12, 8.507059e+37 }
 0x2a7   :  { %v2047_v1 = vpop.eup %2046 }
 0x2a8   :  { %v2049_v5 = vpop.eup %2048  ;;  %v269_v7 = vmul.f32 %v2047_v1, %v264_v62  ;;  %vm274_vm7 = vweird.f32 %v2047_v1 }
 0x2a9   :  { %v411_v6 = vmul.f32 %v2049_v5, %v406_v63  ;;  %vm416_vm3 = vweird.f32 %v2049_v5  ;;  %vm275_vm9 = vmor %vm273_vm8, %vm274_vm7 }
 0x2aa   :  { %v270_v13 = vsub.f32 1.0, %v269_v7  ;;  %vm417_vm5 = vmor %vm415_vm4, %vm416_vm3  ;;  %v194_v7 = vld [vmem:[#allocation2] sm:$0xf] }
 0x2ab   :  { %v412_v8 = vsub.f32 1.0, %v411_v6 }
 0x2ac   :  { %v271_v19 = vmul.f32 %v2047_v1, %v270_v13 }
 0x2ad   :  { %v413_v11 = vmul.f32 %v2049_v5, %v412_v8  ;;  %v511_v8 = vsel %vm307_vm2, %v194_v7, 0 }
 0x2ae   :  { %v272_v24 = vadd.f32 %v2047_v1, %v271_v19  ;;  %520 = vmatpush.bf16.msra.mxu1 %v511_v8 }
 0x2af   :  { %v267_v14 = vpop.xlane.xlu2 %266  ;;  %v414_v16 = vadd.f32 %v2049_v5, %v413_v11 }
 0x2b0   :  { %2050 = vrcp.f32 %v267_v14  ;;  %v276_v30 = vsel %vm275_vm9, %v2047_v1, %v272_v24  ;;  %v294_v43 = vand.u32 2147483648, %v267_v14  ;;  %vm288_vm12 = vweird.f32 %v267_v14 }
 0x2b1   :  { %v418_v18 = vsel %vm417_vm5, %v2049_v5, %v414_v16  ;;  %v281_v32 = vsel %vm278_vm10, %v280_v31, %v276_v30  ;;  %v292_v45 = vand.u32 2147483647, %v267_v14 }
 0x2b2   :  { %v423_v20 = vsel %vm420_vm6, %v422_v17, %v418_v18  ;;  %v298_v35 = vmul.f32 %v2484_v46, %v281_v32  ;;  %v295_v50 = vor.u32 1.1754944e-38, %v294_v43 }
 0x2b3   :  { %v440_v21 = vmul.f32 %v2486_v47, %v423_v20  ;;  %vm293_vm14 = vcmp.eq.f32.partialorder %v292_v45, 8.507059e+37 }
 0x2b4   :  { %v300_v39 = vpack.c.bf16 %v298_v35, %v298_v35 }
 0x2b5   :  { %v442_v22 = vpack.c.bf16 %v440_v21, %v440_v21 }
 0x2b6   :  { %v2051_v25 = vpop.eup %2050 }
 0x2b7   :  { %v409_v23 = vpop.xlane.xlu2 %408  ;;  %1914 = vmatmul.msk.bf16.vlgmr.msrb.gmra.mxu2 %vm206_vm1, %v442_v22  ;;  %v284_v29 = vmul.f32 %v2051_v25, %v267_v14  ;;  %vm289_vm11 = vweird.f32 %v2051_v25 }
 0x2b8   :  { %2052 = vrcp.f32 %v409_v23  ;;  %vm290_vm13 = vmor %vm288_vm12, %vm289_vm11  ;;  %v436_v62 = vand.u32 2147483648, %v409_v23  ;;  %vm430_vm3 = vweird.f32 %v409_v23  ;;  %v434_v63 = vand.u32 2147483647, %v409_v23 }
 0x2b9   :  { %v528_v28 = vpop.permute.xlu1 %527  ;;  %v285_v33 = vsub.f32 1.0, %v284_v29 }
 0x2ba   :  { %v437_v1 = vor.u32 1.1754944e-38, %v436_v62  ;;  %vm435_vm5 = vcmp.eq.f32.partialorder %v434_v63, 8.507059e+37 }
 0x2bb   :  { %v286_v37 = vmul.f32 %v2051_v25, %v285_v33 }
 0x2bd   :  { %v287_v40 = vadd.f32 %v2051_v25, %v286_v37 }
 0x2be   :  { %v2053_v42 = vpop.eup %2052 }
 0x2bf   :  { %v466_v34 = vpop.permute.xlu2 %465  ;;  %v426_v47 = vmul.f32 %v2053_v42, %v409_v23  ;;  %v291_v49 = vsel %vm290_vm13, %v2051_v25, %v287_v40  ;;  %vm431_vm15 = vweird.f32 %v2053_v42 }
 0x2c0   :  { %v471_v51 = vsel %vm307_vm2, %v466_v34, 0  ;;  %v296_v52 = vsel %vm293_vm14, %v295_v50, %v291_v49  ;;  %vm432_vm4 = vmor %vm430_vm3, %vm431_vm15 }
 0x2c1   :  { %v303_v36 = vpop.permute.xlu1 %302  ;;  %v427_v53 = vsub.f32 1.0, %v426_v47  ;;  %v299_v54 = vmul.f32 %v2493_v57, %v296_v52 }
 0x2c2   :  { %v309_v38 = vsel %vm307_vm2, %v303_v36, 0 }
 0x2c3   :  { %318 = vmatpush.bf16.msra.mxu3 %v309_v38  ;;  %v428_v55 = vmul.f32 %v2053_v42, %v427_v53  ;;  %v301_v58 = vpack.c.bf16 %v299_v54, %v299_v54 }
 0x2c5   :  { %v429_v59 = vadd.f32 %v2053_v42, %v428_v55 }
 0x2c6   :  { %1910 = vmatmul.msk.bf16.vlgmr.msra.gmra.mxu3 %vm206_vm1, %v300_v39 }
 0x2c7   :  { %v626_v41 = vpop.permute.xlu2 %625  ;;  %1918 = vmatmul.msk.bf16.vlgmr.msra.gmra.mxu2 %vm206_vm1, %v528_v28  ;;  %v433_v0 = vsel %vm432_vm4, %v2053_v42, %v429_v59 }
 0x2c8   :  { %v631_v44 = vsel %vm307_vm2, %v626_v41, 0  ;;  %v438_v4 = vsel %vm435_vm5, %v437_v1, %v433_v0 }
 0x2c9   :  { %640 = vmatpush.bf16.msrb.mxu0 %v631_v44  ;;  %v325_v46 = vpop.permute.xlu1 %324  ;;  %v441_v57 = vmul.f32 %v2497_v60, %v438_v4 }
 0x2ca   :  { %v330_v48 = vsel %vm307_vm2, %v325_v46, 0 }
 0x2cb   :  { %339 = vmatpush.bf16.msrb.mxu3 %v330_v48  ;;  %v443_v5 = vpack.c.bf16 %v441_v57, %v441_v57 }
 0x2cf   :  { %480 = vmatpush.bf16.msra.mxu3 %v471_v51  ;;  %v716_v20 = vpop.permute.xlu2 %715 }
 0x2d0   :  { %v721_v23 = vsel %vm206_vm1, %v716_v20, 0 }
 0x2d1   :  { %v553_v56 = vpop.permute.xlu1 %552 }
 0x2d2   :  { %v558_v61 = vsel %vm206_vm1, %v553_v56, 0 }
 0x2d6   :  { %1911 = vmatmul.msk.bf16.vlgmr.msrb.gmra.mxu3 %vm206_vm1, %v301_v58 }
 0x2d7   :  { %567 = vmatpush.bf16.xpose.msrb.mxu3 %v558_v61  ;;  %v691_v53 = vpop.permute.xlu2 %690 }
 0x2d9   :  { %v551_v6 = vpop.permute.xlu1 %550 }
 0x2df   :  { %v714_v54 = vpop.permute.xlu2 %713 }
 0x2e6   :  { %1915 = vmatmul.msk.bf16.vlgmr.msra.gmra.mxu3 %vm206_vm1, %v443_v5 }
 0x2f6   :  { %1919 = vmatmul.msk.bf16.vlgmr.msrb.gmra.mxu3 %vm206_vm1, %v551_v6 }
 0x33a   :  { %v461_v9 = vpop.f32.mrf.mxu2 }
 0x342   :  { %v463_v11 = vpop.f32.mrf.mxu2 }
 0x349   :  { %v320_v12 = vpop.f32.mrf.mxu3 }
 0x34a   :  { %v546_v13 = vpop.f32.mrf.mxu2 }
 0x34b   :  { %v573_v14 = vsel %vm206_vm1, %v546_v13, -inf }
 0x34c   :  { %574 = vmax.xlane.f32.xlu1 %v573_v14 }
 0x351   :  { %v322_v16 = vpop.f32.mrf.mxu3 }
 0x352   :  { %v548_v17 = vpop.f32.mrf.mxu2 }
 0x359   :  { %v341_v60 = vpop.f32.mrf.mxu3 }
 0x35a   :  { %v345_v18 = vpack.c.bf16 %v341_v60, %v320_v12 }
 0x35c   :  { %1917 = vmatmul.msk.bf16.vlgmr.msra.gmra.mxu1 %vm206_vm1, %v345_v18 }
 0x361   :  { %v343_v19 = vpop.f32.mrf.mxu3 }
 0x365   :  { %646 = vrot.lane.b32.xlu1 %v2457_v15, %s2281_s12 }
 0x369   :  { %v482_v21 = vpop.f32.mrf.mxu3 }
 0x36a   :  { %v486_v22 = vpack.c.bf16 %v482_v21, %v461_v9 }
 0x36c   :  { %1916 = vmatmul.msk.bf16.vlgmr.msra.gmra.mxu0 %vm206_vm1, %v486_v22 }
 0x36d   :  { %730 = vmatpush.bf16.xpose.msra.mxu0 %v721_v23 }
 0x371   :  { %v484_v24 = vpop.f32.mrf.mxu3 }
 0x379   :  { %v569_v25 = vpop.f32.mrf.mxu3 }
 0x37a   :  { %v576_v37 = vsel %vm206_vm1, %v569_v25, -inf }
 0x381   :  { %v571_v26 = vpop.f32.mrf.mxu3 }
 0x3bf   :  { %v575_v27 = vpop.xlane.xlu1 %574 }
 0x3c0   :  { %v579_v28 = vsub.f32 %v546_v13, %v575_v27 }
 0x3c2   :  { %v581_v29 = vmul.f32 1.442695, %v579_v28 }
 0x3c4   :  { %2054 = vpow2.f32 %v581_v29 }
 0x3ca   :  { %v2055_v30 = vpop.eup %2054 }
 0x3cb   :  { %v585_v31 = vsel %vm206_vm1, %v2055_v30, 0.0 }
 0x3cc   :  { %586 = vadd.xlane.f32.xlu0 %v585_v31 }
 0x3d7   :  { %v647_v32 = vpop.permute.xlu1 %646 }
 0x3d8   :  { %v652_v33 = vsel %vm307_vm2, %v647_v32, 0  ;;  %v196_v32 = vld [vmem:[#allocation2 + $0x8] sm:$0xf] }
 0x3d9   :  { %661 = vmatpush.bf16.msrb.mxu1 %v652_v33  ;;  %v522_v34 = vpop.f32.mrf.mxu1  ;;  %v672_v33 = vsel %vm307_vm2, %v196_v32, 0 }
 0x3da   :  { %681 = vmatpush.bf16.msrb.mxu2 %v672_v33 }
 0x3e0   :  { %692 = vrot.lane.b32.xlu0 %v2451_v10, %s2282_s28 }
 0x3e9   :  { %v502_v35 = vpop.f32.mrf.mxu0 }
 0x3ea   :  { %v2548_v36 = vadd.f32 %v522_v34, %v502_v35  ;;  %v2566_v34 = vpop.f32.mrf.mxu1 }
 0x3f1   :  { %v2556_v62 = vpop.f32.mrf.mxu0 }
 0x40a   :  { %577 = vmax.xlane.f32.xlu0 %v576_v37 }
 0x43f   :  { %v587_v38 = vpop.xlane.xlu0 %586 }
 0x440   :  { %2056 = vrcp.f32 %v587_v38  ;;  %v602_v42 = vand.u32 2147483648, %v587_v38  ;;  %v600_v44 = vand.u32 2147483647, %v587_v38  ;;  %vm596_vm7 = vweird.f32 %v587_v38 }
 0x442   :  { %v603_v46 = vor.u32 1.1754944e-38, %v602_v42  ;;  %vm601_vm9 = vcmp.eq.f32.partialorder %v600_v44, 8.507059e+37 }
 0x446   :  { %v2057_v39 = vpop.eup %2056 }
 0x447   :  { %v592_v40 = vmul.f32 %v2057_v39, %v587_v38  ;;  %vm597_vm6 = vweird.f32 %v2057_v39 }
 0x448   :  { %vm598_vm8 = vmor %vm596_vm7, %vm597_vm6 }
 0x449   :  { %v593_v41 = vsub.f32 1.0, %v592_v40 }
 0x44b   :  { %v594_v43 = vmul.f32 %v2057_v39, %v593_v41 }
 0x44d   :  { %v595_v45 = vadd.f32 %v2057_v39, %v594_v43 }
 0x44f   :  { %v599_v47 = vsel %vm598_vm8, %v2057_v39, %v595_v45 }
 0x450   :  { %v604_v48 = vsel %vm601_vm9, %v603_v46, %v599_v47 }
 0x451   :  { %v621_v49 = vmul.f32 %v2055_v30, %v604_v48 }
 0x452   :  { %v693_v50 = vpop.permute.xlu0 %692 }
 0x453   :  { %v698_v51 = vsel %vm206_vm1, %v693_v50, 0  ;;  %v623_v52 = vpack.c.bf16 %v621_v49, %v621_v49 }
 0x454   :  { %707 = vmatpush.bf16.xpose.msra.mxu3 %v698_v51 }
 0x455   :  { %1920 = vmatmul.msk.bf16.vlgmr.msrb.gmra.mxu0 %vm206_vm1, %v623_v52 }
 0x45b   :  { %1923 = vmatmul.msk.bf16.vlgmr.msra.gmra.mxu3 %vm206_vm1, %v691_v53 }
 0x465   :  { %1924 = vmatmul.msk.bf16.vlgmr.msra.gmra.mxu0 %vm206_vm1, %v714_v54 }
 0x47d   :  { %v578_v55 = vpop.xlane.xlu0 %577 }
 0x47e   :  { %v580_v56 = vsub.f32 %v569_v25, %v578_v55 }
 0x480   :  { %v583_v58 = vmul.f32 1.442695, %v580_v56 }
 0x482   :  { %2058 = vpow2.f32 %v583_v58 }
 0x488   :  { %v2059_v59 = vpop.eup %2058 }
 0x489   :  { %v588_v61 = vsel %vm206_vm1, %v2059_v59, 0.0 }
 0x48a   :  { %589 = vadd.xlane.f32.xlu2 %v588_v61 }
 0x4d2   :  { %v642_v63 = vpop.f32.mrf.mxu0 }
 0x4da   :  { %v644_v0 = vpop.f32.mrf.mxu0 }
 0x4de   :  { %v709_v1 = vpop.f32.mrf.mxu3 }
 0x4df   :  { %v736_v4 = vsel %vm206_vm1, %v709_v1, -inf }
 0x4e0   :  { %737 = vmax.xlane.f32.xlu0 %v736_v4 }
 0x4e2   :  { %v732_v57 = vpop.f32.mrf.mxu0 }
 0x4e3   :  { %v739_v5 = vsel %vm206_vm1, %v732_v57, -inf }
 0x4e4   :  { %740 = vmax.xlane.f32.xlu1 %v739_v5 }
 0x4e6   :  { %v711_v6 = vpop.f32.mrf.mxu3 }
 0x4ea   :  { %v734_v7 = vpop.f32.mrf.mxu0 }
 0x4fd   :  { %v590_v8 = vpop.xlane.xlu2 %589 }
 0x4fe   :  { %2060 = vrcp.f32 %v590_v8  ;;  %v617_v13 = vand.u32 2147483648, %v590_v8  ;;  %v615_v16 = vand.u32 2147483647, %v590_v8  ;;  %vm611_vm11 = vweird.f32 %v590_v8 }
 0x500   :  { %v618_v60 = vor.u32 1.1754944e-38, %v617_v13  ;;  %vm616_vm13 = vcmp.eq.f32.partialorder %v615_v16, 8.507059e+37 }
 0x504   :  { %v2061_v9 = vpop.eup %2060 }
 0x505   :  { %v607_v11 = vmul.f32 %v2061_v9, %v590_v8  ;;  %vm612_vm10 = vweird.f32 %v2061_v9 }
 0x506   :  { %vm613_vm12 = vmor %vm611_vm11, %vm612_vm10 }
 0x507   :  { %v608_v12 = vsub.f32 1.0, %v607_v11 }
 0x509   :  { %v609_v14 = vmul.f32 %v2061_v9, %v608_v12 }
 0x50b   :  { %v610_v17 = vadd.f32 %v2061_v9, %v609_v14 }
 0x50d   :  { %v614_v18 = vsel %vm613_vm12, %v2061_v9, %v610_v17  ;;  %v197_v9 = vld [vmem:[#allocation2 + $0xc] sm:$0xf] }
 0x50e   :  { %v619_v19 = vsel %vm616_vm13, %v618_v60, %v614_v18  ;;  %v835_v11 = vsel %vm307_vm2, %v197_v9, 0  ;;  %v2026_v18 = vld [vmem:[%s2834_s23] ss:$0 sm:$0xff] }
 0x50f   :  { %v622_v20 = vmul.f32 %v2059_v59, %v619_v19  ;;  %844 = vmatpush.bf16.msrb.mxu3 %v835_v11 }
 0x511   :  { %v624_v21 = vpack.c.bf16 %v622_v20, %v622_v20 }
 0x513   :  { %1921 = vmatmul.msk.bf16.vlgmr.msrb.gmra.mxu1 %vm206_vm1, %v624_v21 }
 0x553   :  { %v738_v22 = vpop.xlane.xlu0 %737 }
 0x554   :  { %v742_v23 = vsub.f32 %v709_v1, %v738_v22 }
 0x556   :  { %v744_v24 = vmul.f32 1.442695, %v742_v23 }
 0x557   :  { %v741_v25 = vpop.xlane.xlu1 %740 }
 0x558   :  { %2062 = vpow2.f32 %v744_v24  ;;  %v743_v26 = vsub.f32 %v732_v57, %v741_v25 }
 0x55a   :  { %v746_v27 = vmul.f32 1.442695, %v743_v26 }
 0x55c   :  { %2064 = vpow2.f32 %v746_v27 }
 0x55e   :  { %v2063_v28 = vpop.eup %2062 }
 0x55f   :  { %v748_v29 = vsel %vm206_vm1, %v2063_v28, 0.0 }
 0x560   :  { %749 = vadd.xlane.f32.xlu0 %v748_v29 }
 0x562   :  { %v2065_v30 = vpop.eup %2064 }
 0x563   :  { %v751_v31 = vsel %vm206_vm1, %v2065_v30, 0.0 }
 0x564   :  { %752 = vadd.xlane.f32.xlu2 %v751_v31 }
 0x574   :  { %788 = vrot.lane.b32.xlu0 %v2451_v10, %s2284_s24 }
 0x57c   :  { %809 = vrot.lane.b32.xlu2 %v2457_v15, %s2284_s24 }
 0x590   :  { %v663_v35 = vpop.f32.mrf.mxu1 }
 0x591   :  { %v667_v37 = vpack.c.bf16 %v663_v35, %v642_v63 }
 0x593   :  { %1922 = vmatmul.msk.bf16.vlgmr.msrb.gmra.mxu2 %vm206_vm1, %v667_v37 }
 0x598   :  { %v665_v38 = vpop.f32.mrf.mxu1 }
 0x5d3   :  { %v750_v39 = vpop.xlane.xlu0 %749 }
 0x5d4   :  { %2066 = vrcp.f32 %v750_v39  ;;  %v763_v45 = vand.u32 2147483647, %v750_v39  ;;  %v765_v46 = vand.u32 2147483648, %v750_v39  ;;  %vm759_vm15 = vweird.f32 %v750_v39 }
 0x5d6   :  { %vm764_vm4 = vcmp.eq.f32.partialorder %v763_v45, 8.507059e+37  ;;  %v766_v51 = vor.u32 1.1754944e-38, %v765_v46  ;;  %v1997_v45 = vld [vmem:[#allocation7 + $0x8] sm:$0xff]  ;;  %v1996_v46 = vld [vmem:[#allocation7] sm:$0xff] }
 0x5d7   :  { %v753_v40 = vpop.xlane.xlu2 %752 }
 0x5d8   :  { %2068 = vrcp.f32 %v753_v40  ;;  %v780_v52 = vand.u32 2147483648, %v753_v40  ;;  %v778_v55 = vand.u32 2147483647, %v753_v40  ;;  %vm774_vm6 = vweird.f32 %v753_v40 }
 0x5da   :  { %v2067_v41 = vpop.eup %2066  ;;  %v781_v61 = vor.u32 1.1754944e-38, %v780_v52  ;;  %vm779_vm8 = vcmp.eq.f32.partialorder %v778_v55, 8.507059e+37  ;;  %v1994_v52 = vld [vmem:[#allocation5] sm:$0xff] }
 0x5db   :  { %v755_v42 = vmul.f32 %v2067_v41, %v750_v39  ;;  %vm760_vm14 = vweird.f32 %v2067_v41 }
 0x5dc   :  { %vm761_vm3 = vmor %vm759_vm15, %vm760_vm14 }
 0x5dd   :  { %v756_v43 = vsub.f32 1.0, %v755_v42 }
 0x5de   :  { %v2069_v44 = vpop.eup %2068 }
 0x5df   :  { %v757_v10 = vmul.f32 %v2067_v41, %v756_v43  ;;  %v770_v15 = vmul.f32 %v2069_v44, %v753_v40  ;;  %v810_v47 = vpop.permute.xlu2 %809  ;;  %vm775_vm5 = vweird.f32 %v2069_v44 }
 0x5e0   :  { %v815_v48 = vsel %vm307_vm2, %v810_v47, 0  ;;  %vm776_vm7 = vmor %vm774_vm6, %vm775_vm5 }
 0x5e1   :  { %v758_v49 = vadd.f32 %v2067_v41, %v757_v10  ;;  %v771_v50 = vsub.f32 1.0, %v770_v15  ;;  %824 = vmatpush.bf16.msra.mxu2 %v815_v48  ;;  %v153_v10 = vld [vmem:[%s2835_s30] sm:$0xff]  ;;  %v154_v15 = vld [vmem:[%s2835_s30 + $0x8] sm:$0xff]  ;;  %v1995_v48 = vld [vmem:[#allocation5 + $0x8] sm:$0xff] }
 0x5e2   :  { %v961_v47 = vpack.c.bf16 %v154_v15, %v153_v10  ;;  %953 = vmatpush.bf16.msrb.mxu0 %v1995_v48 }
 0x5e3   :  { %v762_v53 = vsel %vm761_vm3, %v2067_v41, %v758_v49  ;;  %v772_v54 = vmul.f32 %v2069_v44, %v771_v50 }
 0x5e4   :  { %v767_v56 = vsel %vm764_vm4, %v766_v51, %v762_v53 }
 0x5e5   :  { %v784_v58 = vmul.f32 %v2063_v28, %v767_v56  ;;  %v773_v59 = vadd.f32 %v2069_v44, %v772_v54 }
 0x5e6   :  { %v789_v63 = vpop.permute.xlu0 %788  ;;  %954 = vmatpush.bf16.msrb.mxu0 %v1994_v52 }
 0x5e7   :  { %v777_v0 = vsel %vm776_vm7, %v2069_v44, %v773_v59  ;;  %v794_v1 = vsel %vm307_vm2, %v789_v63, 0  ;;  %v786_v5 = vpack.c.bf16 %v784_v58, %v784_v58 }
 0x5e8   :  { %v782_v4 = vsel %vm779_vm8, %v781_v61, %v777_v0  ;;  %803 = vmatpush.bf16.msra.mxu1 %v794_v1 }
 0x5e9   :  { %v785_v57 = vmul.f32 %v2065_v30, %v782_v4  ;;  %v2285_v30 = vmov 32.0  }
 0x5ea   :  { %2070 = vrcp.f32 %v2285_v30 }
 0x5eb   :  { %1925 = vmatmul.msk.bf16.vlgmr.msra.gmra.mxu1 %vm206_vm1, %v786_v5  ;;  %v787_v6 = vpack.c.bf16 %v785_v57, %v785_v57 }
 0x5ec   :  { %991 = vmatpush.bf16.msrb.mxu1 %v1997_v45 }
 0x5ed   :  { %1926 = vmatmul.msk.bf16.vlgmr.msra.gmra.mxu2 %vm206_vm1, %v787_v6 }
 0x5f0   :  { %v2071_v31 = vpop.eup %2070  ;;  %992 = vmatpush.bf16.msrb.mxu1 %v1996_v46 }
 0x5f1   :  { %v869_v32 = vmul.f32 32.0, %v2071_v31  ;;  %vm873_vm9 = vweird.f32 %v2071_v31 }
 0x5f3   :  { %v870_v33 = vsub.f32 1.0, %v869_v32  ;;  %v2030_v32 = vld [vmem:[%s2803_s7] ss:$0 sm:$0xff] }
 0x5fb   :  { %1945 = vmatmul.msk.bf16.vlgmr.msrb.gmra.mxu1 %vm176_vm0, %v961_v47 }
 0x616   :  { %v683_v7 = vpop.f32.mrf.mxu2 }
 0x617   :  { %v688_v8 = vadd.f32 %v683_v7, %v2548_v36  ;;  %v525_v36 = vadd.f32 %v2566_v34, %v2556_v62  ;;  %v871_v62 = vmul.f32 %v2071_v31, %v870_v33 }
 0x619   :  { %v872_v34 = vadd.f32 %v2071_v31, %v871_v62 }
 0x61e   :  { %v685_v12 = vpop.f32.mrf.mxu2 }
 0x61f   :  { %v689_v23 = vadd.f32 %v685_v12, %v525_v36 }
 0x668   :  { %v805_v13 = vpop.f32.mrf.mxu1 }
 0x670   :  { %v807_v14 = vpop.f32.mrf.mxu1  ;;  %v826_v16 = vpop.f32.mrf.mxu2 }
 0x671   :  { %v830_v17 = vpack.c.bf16 %v826_v16, %v805_v13  ;;  %v2028_v13 = vld [vmem:[%s2813_s17] ss:$0 sm:$0xff] }
 0x673   :  { %1927 = vmatmul.msk.bf16.vlgmr.msrb.gmra.mxu3 %vm206_vm1, %v830_v17 }
 0x678   :  { %v828_v60 = vpop.f32.mrf.mxu2 }
 0x6f6   :  { %v846_v19 = vpop.f32.mrf.mxu3 }
 0x6f7   :  { %v851_v20 = vadd.f32 %v846_v19, %v688_v8  ;;  %v2027_v8 = vld [vmem:[%s2812_s16] ss:$0 sm:$0xff] }
 0x6f9   :  { %v856_v21 = vadd.f32 %v2026_v18, %v851_v20  ;;  %v2029_v20 = vld [vmem:[%s2805_s9] ss:$0 sm:$0xff]  ;;  %s2288_s9 = smov 8  }
 0x6fb   :  { %v858_v22 = vadd.f32 %v856_v21, %v2438_v2  ;;  %v2585_v2 = vsel %vm873_vm9, %v2071_v31, %v872_v34  ;;  %v994_v21 = vpop.f32.mrf.mxu1 }
 0x6fc   :  { %v995_v36 = vadd.f32 %v2029_v20, %v994_v21 }
 0x6fd   :  { %v862_v24 = vsel %vm176_vm0, %v858_v22, 0.0 }
 0x6fe   :  { %863 = vadd.xlane.f32.xlu1 %v862_v24  ;;  %v848_v25 = vpop.f32.mrf.mxu3 }
 0x6ff   :  { %v852_v26 = vadd.f32 %v848_v25, %v689_v23 }
 0x701   :  { %v857_v27 = vadd.f32 %v2026_v18, %v852_v26 }
 0x703   :  { %v859_v28 = vadd.f32 %v857_v27, %v2443_v3  ;;  %v996_v26 = vpop.f32.mrf.mxu1 }
 0x704   :  { %v997_v27 = vadd.f32 %v2029_v20, %v996_v26 }
 0x705   :  { %v865_v29 = vsel %vm176_vm0, %v859_v28, 0.0 }
 0x706   :  { %866 = vadd.xlane.f32.xlu0 %v865_v29 }
 0x771   :  { %v864_v35 = vpop.xlane.xlu1 %863 }
 0x772   :  { %v875_v37 = vmul.f32 %v2585_v2, %v864_v35 }
 0x774   :  { %v877_v38 = vsub.f32 %v858_v22, %v875_v37  ;;  %v1006_v22 = vpack.c.bf16 %v995_v36, %v995_v36 }
 0x776   :  { %v879_v39 = vmul.f32 %v877_v38, %v877_v38  ;;  %v1012_v23 = vsel %vm206_vm1, %v1006_v22, 0  ;;  %v1099_v24 = vunpack.c.l.b16 %v1006_v22 }
 0x777   :  { %1021 = vmatpush.bf16.xpose.msrb.mxu2 %v1012_v23 }
 0x778   :  { %v881_v3 = vsel %vm176_vm0, %v879_v39, 0.0  ;;  %v2617_v25 = vpack.c.b16 %v1099_v24, %v1099_v24 }
 0x779   :  { %882 = vadd.xlane.f32.xlu2 %v881_v3  ;;  %v867_v40 = vpop.xlane.xlu0 %866 }
 0x77a   :  { %v876_v41 = vmul.f32 %v2585_v2, %v867_v40 }
 0x77c   :  { %v878_v42 = vsub.f32 %v859_v28, %v876_v41  ;;  %v1007_v28 = vpack.c.bf16 %v997_v27, %v997_v27 }
 0x77e   :  { %v880_v43 = vmul.f32 %v878_v42, %v878_v42  ;;  %v1031_v29 = vsel %vm206_vm1, %v1007_v28, 0  ;;  %v1123_v30 = vunpack.c.l.b16 %v1007_v28 }
 0x77f   :  { %1040 = vmatpush.bf16.xpose.msra.mxu3 %v1031_v29 }
 0x780   :  { %v884_v44 = vsel %vm176_vm0, %v880_v43, 0.0  ;;  %v2622_v31 = vpack.c.b16 %v1123_v30, %v1123_v30 }
 0x781   :  { %885 = vadd.xlane.f32.xlu1 %v884_v44 }
 0x791   :  { %1178 = vrot.lane.b32.xlu2 %v2622_v31, %s2277_s5 }
 0x79a   :  { %1152 = vrot.lane.b32.xlu1 %v2617_v25, %s2277_s5 }
 0x7ec   :  { %v883_v49 = vpop.xlane.xlu2 %882 }
 0x7ed   :  { %v887_v50 = vmul.f32 %v883_v49, %v2585_v2 }
 0x7ef   :  { %v889_v51 = vadd.f32 1e-05, %v887_v50 }
 0x7f1   :  { %2072 = vrsqrt.f32 %v889_v51  ;;  %vm897_vm11 = vweird.f32 %v889_v51 }
 0x7f4   :  { %v886_v53 = vpop.xlane.xlu1 %885 }
 0x7f5   :  { %v888_v54 = vmul.f32 %v886_v53, %v2585_v2 }
 0x7f7   :  { %v2073_v55 = vpop.eup %2072  ;;  %v890_v56 = vadd.f32 1e-05, %v888_v54 }
 0x7f8   :  { %v892_v58 = vmul.f32 %v2073_v55, %v889_v51  ;;  %vm898_vm10 = vweird.f32 %v2073_v55 }
 0x7f9   :  { %2074 = vrsqrt.f32 %v890_v56  ;;  %vm899_vm12 = vmor %vm897_vm11, %vm898_vm10  ;;  %vm907_vm14 = vweird.f32 %v890_v56 }
 0x7fa   :  { %v893_v59 = vmul.f32 %v2073_v55, %v892_v58 }
 0x7fc   :  { %v894_v61 = vmul.f32 0.5, %v893_v59 }
 0x7fe   :  { %v895_v63 = vsub.f32 1.5, %v894_v61 }
 0x7ff   :  { %v2075_v0 = vpop.eup %2074 }
 0x800   :  { %v896_v1 = vmul.f32 %v2073_v55, %v895_v63  ;;  %v902_v4 = vmul.f32 %v2075_v0, %v890_v56  ;;  %vm908_vm13 = vweird.f32 %v2075_v0 }
 0x801   :  { %vm909_vm15 = vmor %vm907_vm14, %vm908_vm13 }
 0x802   :  { %v903_v57 = vmul.f32 %v2075_v0, %v902_v4  ;;  %v900_v5 = vsel %vm899_vm12, %v2073_v55, %v896_v1 }
 0x803   :  { %v911_v9 = vmul.f32 %v900_v5, %v877_v38 }
 0x804   :  { %v904_v6 = vmul.f32 0.5, %v903_v57 }
 0x805   :  { %v916_v14 = vmul.f32 %v2027_v8, %v911_v9 }
 0x806   :  { %v905_v7 = vsub.f32 1.5, %v904_v6 }
 0x807   :  { %v2606_v60 = vadd.f32 %v2028_v13, %v916_v14 }
 0x808   :  { %v906_v11 = vmul.f32 %v2075_v0, %v905_v7 }
 0x80a   :  { %v910_v12 = vsel %vm909_vm15, %v2075_v0, %v906_v11 }
 0x80b   :  { %v912_v16 = vmul.f32 %v910_v12, %v878_v42  ;;  %v1179_v42 = vpop.permute.xlu2 %1178 }
 0x80c   :  { %v1184_v43 = vsel %vm206_vm1, %v1179_v42, 0  ;;  %v1153_v44 = vpop.permute.xlu1 %1152 }
 0x80d   :  { %v917_v17 = vmul.f32 %v2027_v8, %v912_v16  ;;  %1193 = vmatpush.bf16.xpose.msrb.mxu3 %v1184_v43  ;;  %v1158_v45 = vsel %vm206_vm1, %v1153_v44, 0 }
 0x80e   :  { %1167 = vmatpush.bf16.xpose.msra.mxu2 %v1158_v45 }
 0x80f   :  { %v2608_v18 = vadd.f32 %v2028_v13, %v917_v17 }
 0x811   :  { %v923_v19 = vpack.c.bf16 %v2608_v18, %v2606_v60 }
 0x813   :  { %1936 = vmatmul.msk.bf16.vlgmr.msrb.gmra.mxu0 %vm176_vm0, %v923_v19 }
 0x890   :  { %v956_v33 = vpop.f32.mrf.mxu0 }
 0x891   :  { %v957_v62 = vadd.f32 %v2030_v32, %v956_v33 }
 0x893   :  { %v1004_v34 = vpack.c.bf16 %v957_v62, %v957_v62 }
 0x895   :  { %v1148_v35 = vunpack.c.l.b16 %v1004_v34  ;;  %1946 = vmatmul.msk.bf16.vlgmr.msrb.gmra.mxu2 %vm206_vm1, %v1004_v34 }
 0x897   :  { %v2630_v37 = vpack.c.b16 %v1148_v35, %v1148_v35 }
 0x898   :  { %v958_v38 = vpop.f32.mrf.mxu0 }
 0x899   :  { %v959_v39 = vadd.f32 %v2030_v32, %v958_v38  ;;  %1150 = vrot.lane.b32.xlu1 %v2630_v37, %s2277_s5 }
 0x89b   :  { %v1005_v3 = vpack.c.bf16 %v959_v39, %v959_v39 }
 0x89d   :  { %v1174_v40 = vunpack.c.l.b16 %v1005_v3  ;;  %1947 = vmatmul.msk.bf16.vlgmr.msra.gmra.mxu3 %vm206_vm1, %v1005_v3 }
 0x89f   :  { %v2635_v41 = vpack.c.b16 %v1174_v40, %v1174_v40 }
 0x8a1   :  { %1176 = vrot.lane.b32.xlu0 %v2635_v41, %s2277_s5 }
 0x90b   :  { %v1151_v46 = vpop.permute.xlu1 %1150 }
 0x90c   :  { %1950 = vmatmul.msk.bf16.vlgmr.msra.gmra.mxu2 %vm206_vm1, %v1151_v46 }
 0x913   :  { %v1177_v10 = vpop.permute.xlu0 %1176 }
 0x914   :  { %1951 = vmatmul.msk.bf16.vlgmr.msrb.gmra.mxu3 %vm206_vm1, %v1177_v10 }
 0x918   :  { %v1023_v15 = vpop.f32.mrf.mxu2 }
 0x919   :  { %v1046_v47 = vsel %vm206_vm1, %v1023_v15, -inf }
 0x91a   :  { %1047 = vmax.xlane.f32.xlu1 %v1046_v47 }
 0x920   :  { %v1025_v48 = vpop.f32.mrf.mxu2  ;;  %v1042_v49 = vpop.f32.mrf.mxu3 }
 0x921   :  { %v1049_v4 = vsel %vm206_vm1, %v1042_v49, -inf }
 0x928   :  { %v1044_v50 = vpop.f32.mrf.mxu3 }
 0x933   :  { %1101 = vrot.lane.b32.xlu1 %v2617_v25, %s2275_s2 }
 0x98d   :  { %v1048_v51 = vpop.xlane.xlu1 %1047 }
 0x98e   :  { %v1052_v52 = vsub.f32 %v1023_v15, %v1048_v51 }
 0x98f   :  { %v1169_v53 = vpop.f32.mrf.mxu2 }
 0x990   :  { %v1054_v54 = vmul.f32 1.442695, %v1052_v52  ;;  %v1199_v55 = vsel %vm206_vm1, %v1169_v53, -inf }
 0x991   :  { %1200 = vmax.xlane.f32.xlu0 %v1199_v55 }
 0x992   :  { %2076 = vpow2.f32 %v1054_v54 }
 0x997   :  { %v1171_v56 = vpop.f32.mrf.mxu2  ;;  %v2647_v58 = vpop.f32.mrf.mxu3 }
 0x998   :  { %v2077_v59 = vpop.eup %2076  ;;  %v1202_v34 = vsel %vm206_vm1, %v2647_v58, -inf }
 0x999   :  { %v1058_v61 = vsel %vm206_vm1, %v2077_v59, 0.0 }
 0x99a   :  { %1059 = vadd.xlane.f32.xlu2 %v1058_v61 }
 0x99f   :  { %v1197_v63 = vpop.f32.mrf.mxu3 }
 0x9a5   :  { %1251 = vrot.lane.b32.xlu0 %v2617_v25, %s2276_s27  ;;  %v1102_v0 = vpop.permute.xlu1 %1101 }
 0x9a6   :  { %v1107_v1 = vsel %vm307_vm2, %v1102_v0, 0 }
 0x9a7   :  { %1116 = vmatpush.bf16.msra.mxu0 %v1107_v1 }
 0x9b2   :  { %1336 = vrot.lane.b32.xlu2 %v2617_v25, %s2280_s3 }
 0x9cf   :  { %1050 = vmax.xlane.f32.xlu0 %v1049_v4 }
 0x9e3   :  { %1359 = vrot.lane.b32.xlu0 %v2622_v31, %s2280_s3 }
 0xa04   :  { %v1201_v57 = vpop.xlane.xlu0 %1200 }
 0xa05   :  { %v1205_v5 = vsub.f32 %v1169_v53, %v1201_v57 }
 0xa07   :  { %v1207_v6 = vmul.f32 1.442695, %v1205_v5 }
 0xa09   :  { %2078 = vpow2.f32 %v1207_v6 }
 0xa0d   :  { %v1060_v7 = vpop.xlane.xlu2 %1059 }
 0xa0e   :  { %2080 = vrcp.f32 %v1060_v7  ;;  %v1075_v16 = vand.u32 2147483648, %v1060_v7  ;;  %v1073_v20 = vand.u32 2147483647, %v1060_v7  ;;  %vm1069_vm4 = vweird.f32 %v1060_v7 }
 0xa0f   :  { %v2079_v8 = vpop.eup %2078 }
 0xa10   :  { %v1211_v9 = vsel %vm206_vm1, %v2079_v8, 0.0  ;;  %v1076_v36 = vor.u32 1.1754944e-38, %v1075_v16  ;;  %vm1074_vm6 = vcmp.eq.f32.partialorder %v1073_v20, 8.507059e+37 }
 0xa11   :  { %1212 = vadd.xlane.f32.xlu1 %v1211_v9 }
 0xa14   :  { %v2081_v11 = vpop.eup %2080 }
 0xa15   :  { %v1065_v12 = vmul.f32 %v2081_v11, %v1060_v7  ;;  %vm1070_vm3 = vweird.f32 %v2081_v11  ;;  %v1337_v26 = vpop.permute.xlu2 %1336 }
 0xa16   :  { %vm1071_vm5 = vmor %vm1069_vm4, %vm1070_vm3  ;;  %v1342_v28 = vsel %vm206_vm1, %v1337_v26, 0 }
 0xa17   :  { %v1066_v13 = vsub.f32 1.0, %v1065_v12  ;;  %v1252_v14 = vpop.permute.xlu0 %1251 }
 0xa18   :  { %v1257_v17 = vsel %vm307_vm2, %v1252_v14, 0 }
 0xa19   :  { %v1067_v19 = vmul.f32 %v2081_v11, %v1066_v13  ;;  %1266 = vmatpush.bf16.msrb.mxu0 %v1257_v17 }
 0xa1b   :  { %v1068_v21 = vadd.f32 %v2081_v11, %v1067_v19 }
 0xa1d   :  { %v1072_v22 = vsel %vm1071_vm5, %v2081_v11, %v1068_v21 }
 0xa1e   :  { %v1077_v23 = vsel %vm1074_vm6, %v1076_v36, %v1072_v22  ;;  %v999_v22 = vld [vmem:[#allocation8] sm:$0xf] }
 0xa1f   :  { %v1094_v24 = vmul.f32 %v2077_v59, %v1077_v23  ;;  %v1318_v23 = vsel %vm307_vm2, %v999_v22, 0 }
 0xa20   :  { %1327 = vmatpush.bf16.msra.mxu3 %v1318_v23 }
 0xa21   :  { %v1096_v27 = vpack.c.bf16 %v1094_v24, %v1094_v24  ;;  %v1000_v24 = vld [vmem:[#allocation8 + $0x4] sm:$0xf] }
 0xa23   :  { %1948 = vmatmul.msk.bf16.vlgmr.msra.gmra.mxu0 %vm206_vm1, %v1096_v27 }
 0xa24   :  { %1351 = vmatpush.bf16.xpose.msra.mxu0 %v1342_v28 }
 0xa2a   :  { %1334 = vrot.lane.b32.xlu1 %v2630_v37, %s2280_s3 }
 0xa42   :  { %v1051_v29 = vpop.xlane.xlu0 %1050 }
 0xa43   :  { %v1053_v30 = vsub.f32 %v1042_v49, %v1051_v29 }
 0xa45   :  { %v1056_v32 = vmul.f32 1.442695, %v1053_v30 }
 0xa47   :  { %2082 = vpow2.f32 %v1056_v32 }
 0xa4d   :  { %v2083_v33 = vpop.eup %2082 }
 0xa4e   :  { %v1061_v62 = vsel %vm206_vm1, %v2083_v33, 0.0 }
 0xa4f   :  { %1062 = vadd.xlane.f32.xlu2 %v1061_v62 }
 0xa54   :  { %1203 = vmax.xlane.f32.xlu1 %v1202_v34 }
 0xa55   :  { %v1360_v12 = vpop.permute.xlu0 %1359 }
 0xa56   :  { %v1365_v16 = vsel %vm206_vm1, %v1360_v12, 0 }
 0xa67   :  { %1125 = vrot.lane.b32.xlu2 %v2622_v31, %s2275_s2 }
 0xa6d   :  { %1272 = vrot.lane.b32.xlu1 %v2622_v31, %s2276_s27 }
 0xa84   :  { %v1213_v35 = vpop.xlane.xlu1 %1212 }
 0xa85   :  { %2084 = vrcp.f32 %v1213_v35  ;;  %v1228_v40 = vand.u32 2147483648, %v1213_v35  ;;  %v1226_v43 = vand.u32 2147483647, %v1213_v35  ;;  %vm1222_vm8 = vweird.f32 %v1213_v35 }
 0xa87   :  { %v1229_v45 = vor.u32 1.1754944e-38, %v1228_v40  ;;  %vm1227_vm10 = vcmp.eq.f32.partialorder %v1226_v43, 8.507059e+37 }
 0xa8b   :  { %v2085_v38 = vpop.eup %2084 }
 0xa8c   :  { %v1218_v39 = vmul.f32 %v2085_v38, %v1213_v35  ;;  %vm1223_vm7 = vweird.f32 %v2085_v38 }
 0xa8d   :  { %vm1224_vm9 = vmor %vm1222_vm8, %vm1223_vm7 }
 0xa8e   :  { %v1219_v3 = vsub.f32 1.0, %v1218_v39 }
 0xa90   :  { %v1220_v42 = vmul.f32 %v2085_v38, %v1219_v3 }
 0xa92   :  { %v1221_v44 = vadd.f32 %v2085_v38, %v1220_v42 }
 0xa94   :  { %v1225_v46 = vsel %vm1224_vm9, %v2085_v38, %v1221_v44 }
 0xa95   :  { %v1230_v10 = vsel %vm1227_vm10, %v1229_v45, %v1225_v46 }
 0xa96   :  { %v1247_v15 = vmul.f32 %v2079_v8, %v1230_v10 }
 0xa98   :  { %v1249_v47 = vpack.c.bf16 %v1247_v15, %v1247_v15 }
 0xa9a   :  { %1952 = vmatmul.msk.bf16.vlgmr.msrb.gmra.mxu0 %vm206_vm1, %v1249_v47 }
 0xa9c   :  { %v1335_v50 = vpop.permute.xlu1 %1334 }
 0xaa0   :  { %v2672_v48 = vpop.f32.mrf.mxu0 }
 0xaa8   :  { %v1120_v49 = vpop.f32.mrf.mxu0 }
 0xaaa   :  { %1956 = vmatmul.msk.bf16.vlgmr.msra.gmra.mxu0 %vm206_vm1, %v1335_v50 }
 0xac2   :  { %v1063_v51 = vpop.xlane.xlu2 %1062 }
 0xac3   :  { %2086 = vrcp.f32 %v1063_v51  ;;  %v1090_v0 = vand.u32 2147483648, %v1063_v51  ;;  %v1088_v4 = vand.u32 2147483647, %v1063_v51  ;;  %vm1084_vm12 = vweird.f32 %v1063_v51 }
 0xac5   :  { %v1091_v5 = vor.u32 1.1754944e-38, %v1090_v0  ;;  %vm1089_vm14 = vcmp.eq.f32.partialorder %v1088_v4, 8.507059e+37 }
 0xac7   :  { %v1204_v52 = vpop.xlane.xlu1 %1203 }
 0xac8   :  { %v1206_v53 = vsub.f32 %v2647_v58, %v1204_v52 }
 0xac9   :  { %v2087_v54 = vpop.eup %2086 }
 0xaca   :  { %v1080_v55 = vmul.f32 %v2087_v54, %v1063_v51  ;;  %v1209_v56 = vmul.f32 1.442695, %v1206_v53  ;;  %v1126_v59 = vpop.permute.xlu2 %1125  ;;  %vm1085_vm11 = vweird.f32 %v2087_v54 }
 0xacb   :  { %v1131_v61 = vsel %vm307_vm2, %v1126_v59, 0  ;;  %vm1086_vm13 = vmor %vm1084_vm12, %vm1085_vm11 }
 0xacc   :  { %v1081_v63 = vsub.f32 1.0, %v1080_v55  ;;  %2088 = vpow2.f32 %v1209_v56  ;;  %1140 = vmatpush.bf16.msra.mxu1 %v1131_v61 }
 0xace   :  { %v1082_v1 = vmul.f32 %v2087_v54, %v1081_v63 }
 0xad0   :  { %v1083_v57 = vadd.f32 %v2087_v54, %v1082_v1 }
 0xad2   :  { %v2089_v6 = vpop.eup %2088  ;;  %v1087_v7 = vsel %vm1086_vm13, %v2087_v54, %v1083_v57 }
 0xad3   :  { %v1092_v58 = vsel %vm1089_vm14, %v1091_v5, %v1087_v7  ;;  %v1214_v8 = vsel %vm206_vm1, %v2089_v6, 0.0 }
 0xad4   :  { %v1095_v9 = vmul.f32 %v2083_v33, %v1092_v58  ;;  %1215 = vadd.xlane.f32.xlu0 %v1214_v8 }
 0xad6   :  { %v1097_v11 = vpack.c.bf16 %v1095_v9, %v1095_v9 }
 0xad8   :  { %1949 = vmatmul.msk.bf16.vlgmr.msra.gmra.mxu1 %vm206_vm1, %v1097_v11 }
 0xadf   :  { %v1273_v13 = vpop.permute.xlu1 %1272 }
 0xae0   :  { %v1278_v14 = vsel %vm307_vm2, %v1273_v13, 0 }
 0xae1   :  { %1287 = vmatpush.bf16.msrb.mxu1 %v1278_v14 }
 0xae5   :  { %1374 = vmatpush.bf16.xpose.msra.mxu1 %v1365_v16 }
 0xae8   :  { %1357 = vrot.lane.b32.xlu0 %v2635_v41, %s2280_s3 }
 0xaf0   :  { %1432 = vrot.lane.b32.xlu0 %v2617_v25, %s2279_s26 }
 0xaf8   :  { %1499 = vrot.lane.b32.xlu0 %v2617_v25, %s2283_s29 }
 0xb00   :  { %1522 = vrot.lane.b32.xlu0 %v2622_v31, %s2283_s29 }
 0xb08   :  { %1497 = vrot.lane.b32.xlu0 %v2630_v37, %s2283_s29  ;;  %v1298_v37 = vsel %vm307_vm2, %v1000_v24, 0 }
 0xb09   :  { %1307 = vmatpush.bf16.msrb.mxu2 %v1298_v37 }
 0xb10   :  { %1520 = vrot.lane.b32.xlu0 %v2635_v41, %s2283_s29 }
 0xb17   :  { %v1268_v17 = vpop.f32.mrf.mxu0 }
 0xb18   :  { %1453 = vrot.lane.b32.xlu0 %v2622_v31, %s2279_s26 }
 0xb1f   :  { %v1270_v19 = vpop.f32.mrf.mxu0 }
 0xb27   :  { %v1353_v20 = vpop.f32.mrf.mxu0 }
 0xb28   :  { %v1380_v21 = vsel %vm206_vm1, %v1353_v20, -inf }
 0xb29   :  { %1381 = vmax.xlane.f32.xlu2 %v1380_v21 }
 0xb2f   :  { %v1355_v36 = vpop.f32.mrf.mxu0 }
 0xb47   :  { %v1216_v26 = vpop.xlane.xlu0 %1215 }
 0xb48   :  { %2090 = vrcp.f32 %v1216_v26  ;;  %v1243_v29 = vand.u32 2147483648, %v1216_v26  ;;  %v1241_v32 = vand.u32 2147483647, %v1216_v26  ;;  %vm1237_vm3 = vweird.f32 %v1216_v26 }
 0xb4a   :  { %v1244_v34 = vor.u32 1.1754944e-38, %v1243_v29  ;;  %vm1242_vm5 = vcmp.eq.f32.partialorder %v1241_v32, 8.507059e+37 }
 0xb4e   :  { %v2091_v41 = vpop.eup %2090 }
 0xb4f   :  { %v1233_v27 = vmul.f32 %v2091_v41, %v1216_v26  ;;  %vm1238_vm15 = vweird.f32 %v2091_v41 }
 0xb50   :  { %vm1239_vm4 = vmor %vm1237_vm3, %vm1238_vm15 }
 0xb51   :  { %v1234_v28 = vsub.f32 1.0, %v1233_v27 }
 0xb53   :  { %v1235_v30 = vmul.f32 %v2091_v41, %v1234_v28 }
 0xb55   :  { %v1236_v33 = vadd.f32 %v2091_v41, %v1235_v30  ;;  %v1142_v62 = vpop.f32.mrf.mxu1 }
 0xb56   :  { %v1146_v35 = vpack.c.bf16 %v1142_v62, %v2672_v48 }
 0xb57   :  { %v1240_v38 = vsel %vm1239_vm4, %v2091_v41, %v1236_v33 }
 0xb58   :  { %v1245_v39 = vsel %vm1242_vm5, %v1244_v34, %v1240_v38  ;;  %1955 = vmatmul.msk.bf16.vlgmr.msra.gmra.mxu3 %vm206_vm1, %v1146_v35 }
 0xb59   :  { %v1248_v3 = vmul.f32 %v2089_v6, %v1245_v39 }
 0xb5a   :  { %v1358_v40 = vpop.permute.xlu0 %1357 }
 0xb5b   :  { %v1250_v42 = vpack.c.bf16 %v1248_v3, %v1248_v3 }
 0xb5d   :  { %v1144_v43 = vpop.f32.mrf.mxu1  ;;  %1953 = vmatmul.msk.bf16.vlgmr.msrb.gmra.mxu1 %vm206_vm1, %v1250_v42 }
 0xb62   :  { %v1433_v44 = vpop.permute.xlu0 %1432 }
 0xb63   :  { %v1438_v45 = vsel %vm307_vm2, %v1433_v44, 0 }
 0xb64   :  { %1447 = vmatpush.bf16.msra.mxu2 %v1438_v45 }
 0xb6a   :  { %v1500_v46 = vpop.permute.xlu0 %1499 }
 0xb6b   :  { %v1505_v10 = vsel %vm206_vm1, %v1500_v46, 0 }
 0xb6c   :  { %1514 = vmatpush.bf16.xpose.msrb.mxu1 %v1505_v10 }
 0xb6d   :  { %1957 = vmatmul.msk.bf16.vlgmr.msra.gmra.mxu1 %vm206_vm1, %v1358_v40 }
 0xb72   :  { %v1523_v15 = vpop.permute.xlu0 %1522 }
 0xb73   :  { %v1528_v61 = vsel %vm206_vm1, %v1523_v15, 0 }
 0xb7a   :  { %v1498_v47 = vpop.permute.xlu0 %1497 }
 0xb7d   :  { %1961 = vmatmul.msk.bf16.vlgmr.msrb.gmra.mxu1 %vm206_vm1, %v1498_v47 }
 0xb82   :  { %v1521_v48 = vpop.permute.xlu0 %1520 }
 0xb8a   :  { %v1454_v49 = vpop.permute.xlu0 %1453 }
 0xb8b   :  { %v1459_v50 = vsel %vm307_vm2, %v1454_v49, 0 }
 0xb8c   :  { %1468 = vmatpush.bf16.msrb.mxu3 %v1459_v50 }
 0xb9c   :  { %v1382_v51 = vpop.xlane.xlu2 %1381 }
 0xb9d   :  { %v1386_v52 = vsub.f32 %v1353_v20, %v1382_v51 }
 0xb9f   :  { %v1388_v53 = vmul.f32 1.442695, %v1386_v52 }
 0xba1   :  { %2092 = vpow2.f32 %v1388_v53 }
 0xba7   :  { %v2093_v54 = vpop.eup %2092 }
 0xba8   :  { %v1392_v55 = vsel %vm206_vm1, %v2093_v54, 0.0 }
 0xba9   :  { %1393 = vadd.xlane.f32.xlu1 %v1392_v55 }
 0xbda   :  { %v1289_v56 = vpop.f32.mrf.mxu1 }
 0xbdb   :  { %v1293_v59 = vpack.c.bf16 %v1289_v56, %v1268_v17 }
 0xbdd   :  { %1954 = vmatmul.msk.bf16.vlgmr.msrb.gmra.mxu2 %vm206_vm1, %v1293_v59 }
 0xbde   :  { %1537 = vmatpush.bf16.xpose.msrb.mxu2 %v1528_v61 }
 0xbe2   :  { %v1291_v63 = vpop.f32.mrf.mxu1 }
 0xbea   :  { %v1376_v0 = vpop.f32.mrf.mxu1 }
 0xbeb   :  { %v1383_v1 = vsel %vm206_vm1, %v1376_v0, -inf }
 0xbec   :  { %1384 = vmax.xlane.f32.xlu2 %v1383_v1 }
 0xbf2   :  { %v1378_v4 = vpop.f32.mrf.mxu1 }
 0xbfa   :  { %v1516_v57 = vpop.f32.mrf.mxu1 }
 0xbfb   :  { %v1543_v5 = vsel %vm206_vm1, %v1516_v57, -inf }
 0xbfc   :  { %1544 = vmax.xlane.f32.xlu2 %v1543_v5 }
 0xc02   :  { %v1518_v6 = vpop.f32.mrf.mxu1 }
 0xc1c   :  { %v1394_v7 = vpop.xlane.xlu1 %1393 }
 0xc1d   :  { %2094 = vrcp.f32 %v1394_v7  ;;  %v1409_v11 = vand.u32 2147483648, %v1394_v7  ;;  %v1407_v13 = vand.u32 2147483647, %v1394_v7  ;;  %vm1403_vm7 = vweird.f32 %v1394_v7 }
 0xc1f   :  { %v1410_v16 = vor.u32 1.1754944e-38, %v1409_v11  ;;  %vm1408_vm9 = vcmp.eq.f32.partialorder %v1407_v13, 8.507059e+37 }
 0xc23   :  { %v2095_v58 = vpop.eup %2094 }
 0xc24   :  { %v1399_v8 = vmul.f32 %v2095_v58, %v1394_v7  ;;  %vm1404_vm6 = vweird.f32 %v2095_v58 }
 0xc25   :  { %vm1405_vm8 = vmor %vm1403_vm7, %vm1404_vm6 }
 0xc26   :  { %v1400_v9 = vsub.f32 1.0, %v1399_v8 }
 0xc28   :  { %v1401_v12 = vmul.f32 %v2095_v58, %v1400_v9  ;;  %v1001_v9 = vld [vmem:[#allocation8 + $0x8] sm:$0xf] }
 0xc29   :  { %v1479_v11 = vsel %vm307_vm2, %v1001_v9, 0 }
 0xc2a   :  { %v1402_v14 = vadd.f32 %v2095_v58, %v1401_v12  ;;  %1488 = vmatpush.bf16.msrb.mxu0 %v1479_v11  ;;  %v1329_v12 = vpop.f32.mrf.mxu3 }
 0xc2c   :  { %v1406_v17 = vsel %vm1405_vm8, %v2095_v58, %v1402_v14 }
 0xc2d   :  { %v1411_v19 = vsel %vm1408_vm9, %v1410_v16, %v1406_v17 }
 0xc2e   :  { %v1428_v20 = vmul.f32 %v2093_v54, %v1411_v19 }
 0xc30   :  { %v1430_v21 = vpack.c.bf16 %v1428_v20, %v1428_v20 }
 0xc32   :  { %1958 = vmatmul.msk.bf16.vlgmr.msra.gmra.mxu2 %vm206_vm1, %v1430_v21  ;;  %v1331_v13 = vpop.f32.mrf.mxu3 }
 0xc42   :  { %1962 = vmatmul.msk.bf16.vlgmr.msrb.gmra.mxu2 %vm206_vm1, %v1521_v48 }
 0xc5f   :  { %v1385_v36 = vpop.xlane.xlu2 %1384 }
 0xc60   :  { %v1387_v22 = vsub.f32 %v1376_v0, %v1385_v36  ;;  %v2715_v30 = vpop.f32.mrf.mxu2 }
 0xc62   :  { %v1390_v23 = vmul.f32 1.442695, %v1387_v22 }
 0xc64   :  { %2096 = vpow2.f32 %v1390_v23 }
 0xc68   :  { %v2717_v32 = vpop.f32.mrf.mxu2 }
 0xc6a   :  { %v2097_v24 = vpop.eup %2096 }
 0xc6b   :  { %v1395_v37 = vsel %vm206_vm1, %v2097_v24, 0.0 }
 0xc6c   :  { %1396 = vadd.xlane.f32.xlu1 %v1395_v37 }
 0xc6f   :  { %v1545_v26 = vpop.xlane.xlu2 %1544 }
 0xc70   :  { %v1549_v41 = vsub.f32 %v1516_v57, %v1545_v26 }
 0xc72   :  { %v1551_v27 = vmul.f32 1.442695, %v1549_v41 }
 0xc74   :  { %2098 = vpow2.f32 %v1551_v27 }
 0xc7a   :  { %v2099_v28 = vpop.eup %2098 }
 0xc7b   :  { %v1555_v29 = vsel %vm206_vm1, %v2099_v28, 0.0 }
 0xc7c   :  { %1556 = vadd.xlane.f32.xlu0 %v1555_v29 }
 0xcb5   :  { %v2719_v33 = vpop.f32.mrf.mxu2 }
 0xcbd   :  { %v1451_v62 = vpop.f32.mrf.mxu2 }
 0xcc5   :  { %v1539_v34 = vpop.f32.mrf.mxu2 }
 0xcc6   :  { %v1546_v35 = vsel %vm206_vm1, %v1539_v34, -inf }
 0xcc7   :  { %1547 = vmax.xlane.f32.xlu1 %v1546_v35 }
 0xccd   :  { %v1541_v38 = vpop.f32.mrf.mxu2 }
 0xcdf   :  { %v1397_v39 = vpop.xlane.xlu1 %1396 }
 0xce0   :  { %2100 = vrcp.f32 %v1397_v39  ;;  %1595 = vrot.lane.b32.xlu1 %v2617_v25, %s2282_s28  ;;  %v1424_v43 = vand.u32 2147483648, %v1397_v39  ;;  %v1422_v45 = vand.u32 2147483647, %v1397_v39  ;;  %vm1418_vm11 = vweird.f32 %v1397_v39 }
 0xce2   :  { %v1425_v10 = vor.u32 1.1754944e-38, %v1424_v43  ;;  %vm1423_vm13 = vcmp.eq.f32.partialorder %v1422_v45, 8.507059e+37 }
 0xce6   :  { %v2101_v3 = vpop.eup %2100 }
 0xce7   :  { %v1414_v40 = vmul.f32 %v2101_v3, %v1397_v39  ;;  %vm1419_vm10 = vweird.f32 %v2101_v3  ;;  %v1330_v39 = vadd.f32 %v1329_v12, %v2715_v30 }
 0xce8   :  { %vm1420_vm12 = vmor %vm1418_vm11, %vm1419_vm10 }
 0xce9   :  { %v1415_v42 = vsub.f32 1.0, %v1414_v40 }
 0xceb   :  { %v1416_v44 = vmul.f32 %v2101_v3, %v1415_v42 }
 0xced   :  { %v1417_v46 = vadd.f32 %v2101_v3, %v1416_v44 }
 0xcef   :  { %v1421_v15 = vsel %vm1420_vm12, %v2101_v3, %v1417_v46  ;;  %v1557_v50 = vpop.xlane.xlu0 %1556  ;;  %v2031_v46 = vld [vmem:[%s2807_s11] ss:$0 sm:$0xff] }
 0xcf0   :  { %v1426_v47 = vsel %vm1423_vm13, %v1425_v10, %v1421_v15  ;;  %2102 = vrcp.f32 %v1557_v50  ;;  %v1572_v0 = vand.u32 2147483648, %v1557_v50  ;;  %vm1566_vm15 = vweird.f32 %v1557_v50 }
 0xcf1   :  { %v1429_v48 = vmul.f32 %v2097_v24, %v1426_v47  ;;  %v1570_v1 = vand.u32 2147483647, %v1557_v50  ;;  %vm1800_vm13 = vcmask 523264  }
 0xcf2   :  { %v1573_v57 = vor.u32 1.1754944e-38, %v1572_v0 }
 0xcf3   :  { %v1431_v49 = vpack.c.bf16 %v1429_v48, %v1429_v48  ;;  %vm1571_vm4 = vcmp.eq.f32.partialorder %v1570_v1, 8.507059e+37  ;;  %v1332_v48 = vadd.f32 %v1331_v13, %v2717_v32 }
 0xcf5   :  { %1959 = vmatmul.msk.bf16.vlgmr.msrb.gmra.mxu3 %vm206_vm1, %v1431_v49 }
 0xcf6   :  { %v2103_v25 = vpop.eup %2102 }
 0xcf7   :  { %v1562_v52 = vmul.f32 %v2103_v25, %v1557_v50  ;;  %vm1567_vm14 = vweird.f32 %v2103_v25 }
 0xcf8   :  { %vm1568_vm3 = vmor %vm1566_vm15, %vm1567_vm14 }
 0xcf9   :  { %v1563_v55 = vsub.f32 1.0, %v1562_v52 }
 0xcfb   :  { %v1564_v56 = vmul.f32 %v2103_v25, %v1563_v55 }
 0xcfd   :  { %v1565_v63 = vadd.f32 %v2103_v25, %v1564_v56 }
 0xcff   :  { %v1569_v4 = vsel %vm1568_vm3, %v2103_v25, %v1565_v63 }
 0xd00   :  { %v1574_v5 = vsel %vm1571_vm4, %v1573_v57, %v1569_v4 }
 0xd01   :  { %v1591_v6 = vmul.f32 %v2099_v28, %v1574_v5 }
 0xd03   :  { %v1593_v8 = vpack.c.bf16 %v1591_v6, %v1591_v6 }
 0xd3a   :  { %v1548_v51 = vpop.xlane.xlu1 %1547 }
 0xd3b   :  { %v1550_v53 = vsub.f32 %v1539_v34, %v1548_v51  ;;  %v1002_v34 = vld [vmem:[#allocation8 + $0xc] sm:$0xf] }
 0xd3c   :  { %v1642_v38 = vsel %vm307_vm2, %v1002_v34, 0 }
 0xd3d   :  { %v1553_v54 = vmul.f32 1.442695, %v1550_v53  ;;  %1651 = vmatpush.bf16.msra.mxu1 %v1642_v38  ;;  %v2002_v38 = vld [vmem:[%s2810_s14 + $0x10] sm:$0xff] }
 0xd3f   :  { %2104 = vpow2.f32 %v1553_v54 }
 0xd45   :  { %v2105_v59 = vpop.eup %2104 }
 0xd46   :  { %v1558_v61 = vsel %vm206_vm1, %v2105_v59, 0.0 }
 0xd47   :  { %1559 = vadd.xlane.f32.xlu2 %v1558_v61 }
 0xd52   :  { %v1596_v7 = vpop.permute.xlu1 %1595 }
 0xd53   :  { %v1601_v58 = vsel %vm307_vm2, %v1596_v7, 0  ;;  %v1998_v7 = vld [vmem:[#allocation10] sm:$0xff] }
 0xd54   :  { %1610 = vmatpush.bf16.msra.mxu3 %v1601_v58 }
 0xd57   :  { %1963 = vmatmul.msk.bf16.vlgmr.msra.gmra.mxu3 %vm206_vm1, %v1593_v8 }
 0xd5f   :  { %1616 = vrot.lane.b32.xlu2 %v2622_v31, %s2282_s28 }
 0xd78   :  { %v1470_v14 = vpop.f32.mrf.mxu3 }
 0xd79   :  { %v1474_v16 = vpack.c.bf16 %v1470_v14, %v2719_v33 }
 0xd7b   :  { %1960 = vmatmul.msk.bf16.vlgmr.msrb.gmra.mxu0 %vm206_vm1, %v1474_v16 }
 0xd80   :  { %v1472_v17 = vpop.f32.mrf.mxu3 }
 0xdba   :  { %v1560_v19 = vpop.xlane.xlu2 %1559 }
 0xdbb   :  { %2106 = vrcp.f32 %v1560_v19  ;;  %v1587_v24 = vand.u32 2147483648, %v1560_v19  ;;  %v1585_v31 = vand.u32 2147483647, %v1560_v19  ;;  %vm1581_vm6 = vweird.f32 %v1560_v19 }
 0xdbd   :  { %v1588_v41 = vor.u32 1.1754944e-38, %v1587_v24  ;;  %vm1586_vm8 = vcmp.eq.f32.partialorder %v1585_v31, 8.507059e+37  ;;  %v2032_v24 = vld [vmem:[%s2814_s18] ss:$0 sm:$0xff] }
 0xdc1   :  { %v2107_v20 = vpop.eup %2106 }
 0xdc2   :  { %v1577_v21 = vmul.f32 %v2107_v20, %v1560_v19  ;;  %v1617_v36 = vpop.permute.xlu2 %1616  ;;  %vm1582_vm5 = vweird.f32 %v2107_v20 }
 0xdc3   :  { %v1622_v22 = vsel %vm307_vm2, %v1617_v36, 0  ;;  %vm1583_vm7 = vmor %vm1581_vm6, %vm1582_vm5 }
 0xdc4   :  { %v1578_v23 = vsub.f32 1.0, %v1577_v21  ;;  %1631 = vmatpush.bf16.msra.mxu0 %v1622_v22 }
 0xdc6   :  { %v1579_v37 = vmul.f32 %v2107_v20, %v1578_v23 }
 0xdc8   :  { %v1580_v26 = vadd.f32 %v2107_v20, %v1579_v37 }
 0xdca   :  { %v1584_v27 = vsel %vm1583_vm7, %v2107_v20, %v1580_v26 }
 0xdcb   :  { %v1589_v28 = vsel %vm1586_vm8, %v1588_v41, %v1584_v27  ;;  %v2033_v41 = vld [vmem:[%s2815_s19] ss:$0 sm:$0xff] }
 0xdcc   :  { %v1592_v29 = vmul.f32 %v2105_v59, %v1589_v28 }
 0xdce   :  { %v1594_v33 = vpack.c.bf16 %v1592_v29, %v1592_v29 }
 0xdd0   :  { %1964 = vmatmul.msk.bf16.vlgmr.msra.gmra.mxu0 %vm206_vm1, %v1594_v33 }
 0xdda   :  { %v1612_v62 = vpop.f32.mrf.mxu3 }
 0xde2   :  { %v1614_v35 = vpop.f32.mrf.mxu3 }
 0xde3   :  { %v2003_v35 = vld [vmem:[%s2810_s14 + $0x18] sm:$0xff] }
 0xde4   :  { %1808 = vmatpush.bf16.msrb.mxu3 %v2003_v35 }
 0xde8   :  { %1809 = vmatpush.bf16.msrb.mxu3 %v2002_v38 }
 0xdf8   :  { %v1490_v3 = vpop.f32.mrf.mxu0 }
 0xdf9   :  { %v1495_v40 = vadd.f32 %v1490_v3, %v1330_v39  ;;  %v2001_v39 = vld [vmem:[%s2810_s14 + $0x8] sm:$0xff]  ;;  %v2000_v3 = vld [vmem:[%s2810_s14] sm:$0xff] }
 0xdfa   :  { %1810 = vmatpush.bf16.msrb.mxu3 %v2001_v39 }
 0xdfe   :  { %1811 = vmatpush.bf16.msrb.mxu3 %v2000_v3 }
 0xe00   :  { %v1492_v42 = vpop.f32.mrf.mxu0 }
 0xe01   :  { %v1496_v30 = vadd.f32 %v1492_v42, %v1332_v48  ;;  %v2034_v42 = vld [vmem:[%s2809_s13] ss:$0 sm:$0xff] }
 0xe4d   :  { %v1633_v43 = vpop.f32.mrf.mxu0 }
 0xe4e   :  { %v1637_v44 = vpack.c.bf16 %v1633_v43, %v1612_v62 }
 0xe50   :  { %1965 = vmatmul.msk.bf16.vlgmr.msra.gmra.mxu1 %vm206_vm1, %v1637_v44 }
 0xe55   :  { %v1635_v45 = vpop.f32.mrf.mxu0 }
 0xecd   :  { %v1653_v10 = vpop.f32.mrf.mxu1 }
 0xece   :  { %v1658_v15 = vadd.f32 %v1653_v10, %v1495_v40 }
 0xed0   :  { %v1663_v47 = vadd.f32 %v2031_v46, %v1658_v15 }
 0xed2   :  { %v1665_v49 = vadd.f32 %v1663_v47, %v2606_v60  ;;  %v2035_v47 = vld [vmem:[%s2811_s15] ss:$0 sm:$0xff] }
 0xed4   :  { %v1669_v50 = vsel %vm176_vm0, %v1665_v49, 0.0 }
 0xed5   :  { %1670 = vadd.xlane.f32.xlu1 %v1669_v50  ;;  %v1655_v25 = vpop.f32.mrf.mxu1 }
 0xed6   :  { %v1659_v51 = vadd.f32 %v1655_v25, %v1496_v30 }
 0xed8   :  { %v1664_v52 = vadd.f32 %v2031_v46, %v1659_v51 }
 0xeda   :  { %v1666_v53 = vadd.f32 %v1664_v52, %v2608_v18  ;;  %v1999_v18 = vld [vmem:[#allocation10 + $0x8] sm:$0xff] }
 0xedb   :  { %1753 = vmatpush.bf16.msra.mxu2 %v1999_v18 }
 0xedc   :  { %v1672_v54 = vsel %vm176_vm0, %v1666_v53, 0.0 }
 0xedd   :  { %1673 = vadd.xlane.f32.xlu2 %v1672_v54 }
 0xedf   :  { %1754 = vmatpush.bf16.msra.mxu2 %v1998_v7 }
 0xf48   :  { %v1671_v55 = vpop.xlane.xlu1 %1670 }
 0xf49   :  { %v1675_v56 = vmul.f32 %v1671_v55, %v2585_v2 }
 0xf4b   :  { %v1677_v59 = vsub.f32 %v1665_v49, %v1675_v56 }
 0xf4d   :  { %v1679_v61 = vmul.f32 %v1677_v59, %v1677_v59 }
 0xf4f   :  { %v1681_v32 = vsel %vm176_vm0, %v1679_v61, 0.0 }
 0xf50   :  { %1682 = vadd.xlane.f32.xlu0 %v1681_v32  ;;  %v1674_v60 = vpop.xlane.xlu2 %1673 }
 0xf51   :  { %v1676_v63 = vmul.f32 %v1674_v60, %v2585_v2 }
 0xf53   :  { %v1678_v0 = vsub.f32 %v1666_v53, %v1676_v63 }
 0xf55   :  { %v1680_v1 = vmul.f32 %v1678_v0, %v1678_v0 }
 0xf57   :  { %v1684_v4 = vsel %vm176_vm0, %v1680_v1, 0.0 }
 0xf58   :  { %1685 = vadd.xlane.f32.xlu0 %v1684_v4 }
 0xfc3   :  { %v1683_v57 = vpop.xlane.xlu0 %1682 }
 0xfc4   :  { %v1687_v5 = vmul.f32 %v1683_v57, %v2585_v2 }
 0xfc6   :  { %v1689_v6 = vadd.f32 1e-05, %v1687_v5 }
 0xfc8   :  { %2108 = vrsqrt.f32 %v1689_v6  ;;  %vm1697_vm2 = vweird.f32 %v1689_v6 }
 0xfcb   :  { %v1686_v58 = vpop.xlane.xlu0 %1685 }
 0xfcc   :  { %v1688_v8 = vmul.f32 %v1686_v58, %v2585_v2 }
 0xfce   :  { %v2109_v9 = vpop.eup %2108  ;;  %v1690_v11 = vadd.f32 1e-05, %v1688_v8 }
 0xfcf   :  { %v1692_v12 = vmul.f32 %v2109_v9, %v1689_v6  ;;  %vm1698_vm1 = vweird.f32 %v2109_v9 }
 0xfd0   :  { %2110 = vrsqrt.f32 %v1690_v11  ;;  %vm1699_vm9 = vmor %vm1697_vm2, %vm1698_vm1  ;;  %vm1707_vm11 = vweird.f32 %v1690_v11 }
 0xfd1   :  { %v1693_v13 = vmul.f32 %v2109_v9, %v1692_v12 }
 0xfd3   :  { %v1694_v14 = vmul.f32 0.5, %v1693_v13 }
 0xfd5   :  { %v1695_v16 = vsub.f32 1.5, %v1694_v14 }
 0xfd6   :  { %v2111_v17 = vpop.eup %2110 }
 0xfd7   :  { %v1696_v19 = vmul.f32 %v2109_v9, %v1695_v16  ;;  %v1702_v20 = vmul.f32 %v2111_v17, %v1690_v11  ;;  %vm1708_vm10 = vweird.f32 %v2111_v17 }
 0xfd8   :  { %vm1709_vm12 = vmor %vm1707_vm11, %vm1708_vm10 }
 0xfd9   :  { %v1703_v21 = vmul.f32 %v2111_v17, %v1702_v20  ;;  %v1700_v36 = vsel %vm1699_vm9, %v2109_v9, %v1696_v19 }
 0xfda   :  { %v1711_v37 = vmul.f32 %v1700_v36, %v1677_v59 }
 0xfdb   :  { %v1704_v22 = vmul.f32 0.5, %v1703_v21 }
 0xfdc   :  { %v1716_v27 = vmul.f32 %v2032_v24, %v1711_v37 }
 0xfdd   :  { %v1705_v23 = vsub.f32 1.5, %v1704_v22 }
 0xfde   :  { %v1721_v33 = vadd.f32 %v2033_v41, %v1716_v27 }
 0xfdf   :  { %v1706_v31 = vmul.f32 %v2111_v17, %v1705_v23 }
 0xfe1   :  { %v1710_v26 = vsel %vm1709_vm12, %v2111_v17, %v1706_v31  ;;  %v2036_v17 = vld [vmem:[%s2816_s20] ss:$0 sm:$0xff]  ;;  %s2286_s20 = smov [#allocation11]  }
 0xfe2   :  { %v1712_v28 = vmul.f32 %v1710_v26, %v1678_v0  ;;  %s1882_s24 = sshll.u32 %s2286_s20, 4  ;;  %s1883_s24 = int_to_ptr.vmem [resolvable:$true] %s1882_s24 }
 0xfe4   :  { %v1717_v29 = vmul.f32 %v2032_v24, %v1712_v28 }
 0xfe6   :  { %v1722_v62 = vadd.f32 %v2033_v41, %v1717_v29 }
 0xfe8   :  { %v1723_v34 = vpack.c.bf16 %v1722_v62, %v1721_v33 }
 0xfea   :  { %1974 = vmatmul.msk.bf16.vlgmr.msra.gmra.mxu2 %vm176_vm0, %v1723_v34 }
0x106d   :  { %v1756_v40 = vpop.f32.mrf.mxu2 }
0x106e   :  { %v1757_v43 = vadd.f32 %v2034_v42, %v1756_v40 }
0x1070   :  { %v1761_v46 = vmax.f32 %v1757_v43, 0.0 }
0x1075   :  { %v1758_v44 = vpop.f32.mrf.mxu2 }
0x1076   :  { %v1759_v45 = vadd.f32 %v2034_v42, %v1758_v44 }
0x1078   :  { %v1762_v10 = vmax.f32 %v1759_v45, 0.0 }
0x107a   :  { %v1763_v15 = vpack.c.bf16 %v1762_v10, %v1761_v46 }
0x107c   :  { %1991 = vmatmul.msk.bf16.vlgmr.msrb.gmra.mxu3 %vm1800_vm13, %v1763_v15 }
0x10ff   :  { %v1813_v48 = vpop.f32.mrf.mxu3 }
0x1100   :  { %v1814_v49 = vadd.f32 %v2035_v47, %v1813_v48 }
0x1102   :  { %v1818_v30 = vadd.f32 %v1814_v49, %v1721_v33 }
0x1104   :  { %v1822_v50 = vsel %vm176_vm0, %v1818_v30, 0.0 }
0x1105   :  { %1823 = vadd.xlane.f32.xlu0 %v1822_v50 }
0x1107   :  { %v1815_v25 = vpop.f32.mrf.mxu3 }
0x1108   :  { %v1816_v51 = vadd.f32 %v2035_v47, %v1815_v25 }
0x110a   :  { %v1819_v52 = vadd.f32 %v1816_v51, %v1722_v62 }
0x110c   :  { %v1825_v53 = vsel %vm176_vm0, %v1819_v52, 0.0 }
0x110d   :  { %1826 = vadd.xlane.f32.xlu0 %v1825_v53 }
0x1178   :  { %v1824_v54 = vpop.xlane.xlu0 %1823 }
0x1179   :  { %v1828_v55 = vmul.f32 %v1824_v54, %v2585_v2 }
0x117b   :  { %v1830_v56 = vsub.f32 %v1818_v30, %v1828_v55 }
0x117d   :  { %v1832_v59 = vmul.f32 %v1830_v56, %v1830_v56 }
0x117f   :  { %v1834_v61 = vsel %vm176_vm0, %v1832_v59, 0.0 }
0x1180   :  { %1835 = vadd.xlane.f32.xlu1 %v1834_v61  ;;  %v1827_v32 = vpop.xlane.xlu0 %1826 }
0x1181   :  { %v1829_v60 = vmul.f32 %v1827_v32, %v2585_v2 }
0x1183   :  { %v1831_v63 = vsub.f32 %v1819_v52, %v1829_v60 }
0x1185   :  { %v1833_v0 = vmul.f32 %v1831_v63, %v1831_v63 }
0x1187   :  { %v1837_v1 = vsel %vm176_vm0, %v1833_v0, 0.0 }
0x1188   :  { %1838 = vadd.xlane.f32.xlu0 %v1837_v1 }
0x11f3   :  { %v1836_v4 = vpop.xlane.xlu1 %1835 }
0x11f4   :  { %v1840_v18 = vmul.f32 %v1836_v4, %v2585_v2 }
0x11f6   :  { %v1842_v57 = vadd.f32 1e-05, %v1840_v18 }
0x11f8   :  { %2112 = vrsqrt.f32 %v1842_v57  ;;  %vm1850_vm15 = vweird.f32 %v1842_v57 }
0x11fb   :  { %v1839_v5 = vpop.xlane.xlu0 %1838 }
0x11fc   :  { %v1841_v6 = vmul.f32 %v1839_v5, %v2585_v2  ;;  %v2037_v2 = vld [vmem:[%s2817_s21] ss:$0 sm:$0xff]  ;;  %s2287_s21 = smov 128  }
0x11fe   :  { %v2113_v7 = vpop.eup %2112  ;;  %v1843_v58 = vadd.f32 1e-05, %v1841_v6 }
0x11ff   :  { %v1845_v8 = vmul.f32 %v2113_v7, %v1842_v57  ;;  %vm1851_vm14 = vweird.f32 %v2113_v7 }
0x1200   :  { %2114 = vrsqrt.f32 %v1843_v58  ;;  %vm1852_vm3 = vmor %vm1850_vm15, %vm1851_vm14  ;;  %vm1860_vm5 = vweird.f32 %v1843_v58 }
0x1201   :  { %v1846_v9 = vmul.f32 %v2113_v7, %v1845_v8 }
0x1203   :  { %v1847_v11 = vmul.f32 0.5, %v1846_v9 }
0x1205   :  { %v1848_v12 = vsub.f32 1.5, %v1847_v11 }
0x1206   :  { %v2115_v13 = vpop.eup %2114 }
0x1207   :  { %v1849_v14 = vmul.f32 %v2113_v7, %v1848_v12  ;;  %v1855_v16 = vmul.f32 %v2115_v13, %v1843_v58  ;;  %vm1861_vm4 = vweird.f32 %v2115_v13 }
0x1208   :  { %vm1862_vm6 = vmor %vm1860_vm5, %vm1861_vm4 }
0x1209   :  { %v1853_v19 = vsel %vm1852_vm3, %v2113_v7, %v1849_v14  ;;  %v1856_v20 = vmul.f32 %v2115_v13, %v1855_v16 }
0x120a   :  { %v1864_v21 = vmul.f32 %v1853_v19, %v1830_v56 }
0x120b   :  { %v1857_v36 = vmul.f32 0.5, %v1856_v20 }
0x120c   :  { %v1869_v22 = vmul.f32 %v2036_v17, %v1864_v21 }
0x120d   :  { %v1858_v23 = vsub.f32 1.5, %v1857_v36 }
0x120e   :  { %v1874_v24 = vadd.f32 %v2037_v2, %v1869_v22 }
0x120f   :  { %v1859_v37 = vmul.f32 %v2115_v13, %v1858_v23 }
0x1210   :  { %1876 = vst.msk [vmem:[#allocation11] sm:$0xff] %vm176_vm0, %v1874_v24 }
0x1211   :  { %v1863_v31 = vsel %vm1862_vm6, %v2115_v13, %v1859_v37 }
0x1212   :  { %v1865_v26 = vmul.f32 %v1863_v31, %v1831_v63 }
0x1214   :  { %v1870_v41 = vmul.f32 %v2036_v17, %v1865_v26 }
0x1216   :  { %v1875_v27 = vadd.f32 %v2037_v2, %v1870_v41 }
0x1218   :  { %1877 = vst.msk [vmem:[#allocation11 + $0x8] sm:$0xff] %vm176_vm0, %v1875_v27 }
0x1219   :  { %1890 = dma.vmem_to_hbm [thread:$0]  %s1883_s24, 256, %s1885_s10, [#allocation4], %s2287_s21, %s2287_s21, %s2288_s9  }
0x121a   :  { %2266 = dma.done.wait [#allocation4], 256  }
0x121b   :  { %2267 = vsyncadd [#allocation4], 4294967040 }
0x121c   :  { %1895 = vsyncpa [#allocation3], 1 }
0x121d   :  { %1896 = vsyncpa [#allocation6], 1 }
0x121e   :  { %1897 = vsyncpa [#allocation9], 1 }
0x121f   :  { %1898 = vsyncpa [#allocation4], 1 }

</bundles_post_ra>
